<compile_context>
chip_gen: v6e
topology: v6e:2x2x1
jax: 0.10.0
libtpu: 0.0.40
codegen_flags: <defaults>
</compile_context>

<pallas_src>
import functools

import jax
import jax.numpy as jnp
import numpy as np
from jax.experimental import pallas as pl
from jax.experimental.pallas import tpu as pltpu


def _freq_bands(n_freqs, logscale):
    if logscale:
        return tuple(float(2.0 ** k) for k in range(n_freqs))
    return tuple(float(v) for v in np.linspace(1.0, 2.0 ** (n_freqs - 1), n_freqs))


def _round_up(x, m):
    return (x + m - 1) // m * m


def _embedding_kernel(xt_ref, out_ref, *, freq_bands, c):
    """Lane-dense embedding.

    xt_ref : (C, tile_b)      -- batch on the lane axis.
    out_ref: (out_c, tile_b)  -- row groups of C: [x, sin(f0 x), cos(f0 x), ...].
    Each part is stored directly (no concatenate), keeping vreg pressure low.
    """
    x = xt_ref[...].astype(jnp.float32)
    out_ref[0:c, :] = x.astype(out_ref.dtype)
    for k, f in enumerate(freq_bands):      # static Python loop -> fully unrolled
        fx = x * f
        out_ref[(2 * k + 1) * c:(2 * k + 2) * c, :] = jnp.sin(fx).astype(out_ref.dtype)
        out_ref[(2 * k + 2) * c:(2 * k + 3) * c, :] = jnp.cos(fx).astype(out_ref.dtype)


@functools.partial(jax.jit, static_argnames=("n_freqs", "logscale", "tile_b", "out_dtype"))
def embedding_forward(x, n_freqs, logscale=True, tile_b=8192, out_dtype=None):
    """Pallas implementation of Embedding.forward.  x: (B, C) -> (B, C*(2*n_freqs+1))."""
    b, c = x.shape
    out_c = c * (2 * n_freqs + 1)
    out_dtype = x.dtype if out_dtype is None else jnp.dtype(out_dtype)
    freq_bands = _freq_bands(n_freqs, logscale)

    # Batch is the lane dim -> tile must be a multiple of 128.  Pad B up to a
    # multiple of the tile instead of collapsing the grid to a single block.
    tile = min(_round_up(tile_b, 128), _round_up(b, 128))
    b_pad = _round_up(b, tile)

    xt = jnp.transpose(x)                                   # (C, B), cheap
    if b_pad != b:
        xt = jnp.pad(xt, ((0, 0), (0, b_pad - b)))

    grid = (b_pad // tile,)

    in_bytes = b_pad * c * jnp.dtype(x.dtype).itemsize
    out_bytes = b_pad * out_c * jnp.dtype(out_dtype).itemsize
    cost = pl.CostEstimate(
        flops=b_pad * c * n_freqs,                 # freq * x multiplies
        transcendentals=2 * b_pad * c * n_freqs,   # sin + cos
        bytes_accessed=in_bytes + out_bytes,
    )

    kernel = functools.partial(_embedding_kernel, freq_bands=freq_bands, c=c)
    out_t = pl.pallas_call(
        kernel,
        out_shape=jax.ShapeDtypeStruct((out_c, b_pad), out_dtype),
        grid_spec=pltpu.PrefetchScalarGridSpec(
            num_scalar_prefetch=0,
            grid=grid,
            in_specs=[pl.BlockSpec((c, tile), lambda i: (0, i))],
            out_specs=pl.BlockSpec((out_c, tile), lambda i: (0, i)),
        ),
        compiler_params=pltpu.CompilerParams(
            dimension_semantics=("parallel",),
        ),
        cost_estimate=cost,
    )(xt)

    # Back to the PyTorch layout (B, out_c); slice off the batch padding.
    return jnp.transpose(out_t)[:b]


def embedding_reference(x, n_freqs, logscale=True):
    """Pure-JAX reference mirroring the PyTorch forward exactly."""
    parts = [x]
    for f in _freq_bands(n_freqs, logscale):
        parts.append(jnp.sin(f * x))
        parts.append(jnp.cos(f * x))
    return jnp.concatenate(parts, axis=-1)


if __name__ == "__main__":
    key = jax.random.PRNGKey(0)

    # NeRF xyz embedding: in_channels=3, N_freqs=10 -> out_channels=63.
    # B=250 is deliberately NOT a multiple of 128 to exercise the pad/slice path.
    B, C, N_FREQS = 250, 3, 10
    x = jax.random.uniform(key, (B, C), jnp.float32, minval=-1.0, maxval=1.0)

    out = embedding_forward(x, n_freqs=N_FREQS, logscale=True)
    jax.block_until_ready(out)
    ref = embedding_reference(x, N_FREQS, logscale=True)
    assert out.shape == (B, C * (2 * N_FREQS + 1))
    # sin/cos args reach ~2^9 rad; allow for range-reduction differences.
    assert jnp.allclose(out, ref, atol=1e-3, rtol=1e-3)

    # Linear-scale bands (logscale=False) on the same input.
    out_lin = embedding_forward(x, n_freqs=N_FREQS, logscale=False)
    jax.block_until_ready(out_lin)
    ref_lin = embedding_reference(x, N_FREQS, logscale=False)
    assert jnp.allclose(out_lin, ref_lin, atol=1e-3, rtol=1e-3)

    print("KERNEL_OK")
</pallas_src>

<mosaic_0001>
module attributes {stable_mosaic.version = 11 : i64} {
  func.func @_embedding_kernel(%arg0: i32, %arg1: memref<3x256xf32, #tpu.memory_space<vmem>>, %arg2: memref<63x256xf32, #tpu.memory_space<vmem>>) attributes {dimension_semantics = [#tpu.dimension_semantics<parallel>], iteration_bounds = array<i64: 1>, scalar_prefetch = 0 : i64, scratch_operands = 0 : i64, tpu.core_type = #tpu.core_type<tc>, window_params = [{transform_indices = @transform_0, window_bounds = array<i64: 3, 256>}, {transform_indices = @transform_1, window_bounds = array<i64: 63, 256>}]} {
    %c0 = arith.constant 0 : index
    %c0_0 = arith.constant 0 : index
    %0 = vector.load %arg1[%c0, %c0_0] : memref<3x256xf32, #tpu.memory_space<vmem>>, vector<3x256xf32>
    %c0_1 = arith.constant 0 : index
    %c0_2 = arith.constant 0 : index
    %1 = vector.load %arg2[%c0_1, %c0_2] : memref<63x256xf32, #tpu.memory_space<vmem>>, vector<3x256xf32>
    tpu.vector_store %arg2[%c0_1, %c0_2], %0 {strides = array<i32>} : memref<63x256xf32, #tpu.memory_space<vmem>>, vector<3x256xf32>,
    %cst = arith.constant 1.000000e+00 : f32
    %2 = vector.broadcast %cst : f32 to vector<3x256xf32>
    %3 = arith.mulf %0, %2 : vector<3x256xf32>
    %4 = math.sin %3 : vector<3x256xf32>
    %c3 = arith.constant 3 : index
    %c0_3 = arith.constant 0 : index
    %5 = vector.load %arg2[%c3, %c0_3] : memref<63x256xf32, #tpu.memory_space<vmem>>, vector<3x256xf32>
    tpu.vector_store %arg2[%c3, %c0_3], %4 {strides = array<i32>} : memref<63x256xf32, #tpu.memory_space<vmem>>, vector<3x256xf32>,
    %6 = math.cos %3 : vector<3x256xf32>
    %c6 = arith.constant 6 : index
    %c0_4 = arith.constant 0 : index
    %7 = vector.load %arg2[%c6, %c0_4] : memref<63x256xf32, #tpu.memory_space<vmem>>, vector<3x256xf32>
    tpu.vector_store %arg2[%c6, %c0_4], %6 {strides = array<i32>} : memref<63x256xf32, #tpu.memory_space<vmem>>, vector<3x256xf32>,
    %cst_5 = arith.constant 2.000000e+00 : f32
    %8 = vector.broadcast %cst_5 : f32 to vector<3x256xf32>
    %9 = arith.mulf %0, %8 : vector<3x256xf32>
    %10 = math.sin %9 : vector<3x256xf32>
    %c9 = arith.constant 9 : index
    %c0_6 = arith.constant 0 : index
    %11 = vector.load %arg2[%c9, %c0_6] : memref<63x256xf32, #tpu.memory_space<vmem>>, vector<3x256xf32>
    tpu.vector_store %arg2[%c9, %c0_6], %10 {strides = array<i32>} : memref<63x256xf32, #tpu.memory_space<vmem>>, vector<3x256xf32>,
    %12 = math.cos %9 : vector<3x256xf32>
    %c12 = arith.constant 12 : index
    %c0_7 = arith.constant 0 : index
    %13 = vector.load %arg2[%c12, %c0_7] : memref<63x256xf32, #tpu.memory_space<vmem>>, vector<3x256xf32>
    tpu.vector_store %arg2[%c12, %c0_7], %12 {strides = array<i32>} : memref<63x256xf32, #tpu.memory_space<vmem>>, vector<3x256xf32>,
    %cst_8 = arith.constant 4.000000e+00 : f32
    %14 = vector.broadcast %cst_8 : f32 to vector<3x256xf32>
    %15 = arith.mulf %0, %14 : vector<3x256xf32>
    %16 = math.sin %15 : vector<3x256xf32>
    %c15 = arith.constant 15 : index
    %c0_9 = arith.constant 0 : index
    %17 = vector.load %arg2[%c15, %c0_9] : memref<63x256xf32, #tpu.memory_space<vmem>>, vector<3x256xf32>
    tpu.vector_store %arg2[%c15, %c0_9], %16 {strides = array<i32>} : memref<63x256xf32, #tpu.memory_space<vmem>>, vector<3x256xf32>,
    %18 = math.cos %15 : vector<3x256xf32>
    %c18 = arith.constant 18 : index
    %c0_10 = arith.constant 0 : index
    %19 = vector.load %arg2[%c18, %c0_10] : memref<63x256xf32, #tpu.memory_space<vmem>>, vector<3x256xf32>
    tpu.vector_store %arg2[%c18, %c0_10], %18 {strides = array<i32>} : memref<63x256xf32, #tpu.memory_space<vmem>>, vector<3x256xf32>,
    %cst_11 = arith.constant 8.000000e+00 : f32
    %20 = vector.broadcast %cst_11 : f32 to vector<3x256xf32>
    %21 = arith.mulf %0, %20 : vector<3x256xf32>
    %22 = math.sin %21 : vector<3x256xf32>
    %c21 = arith.constant 21 : index
    %c0_12 = arith.constant 0 : index
    %23 = vector.load %arg2[%c21, %c0_12] : memref<63x256xf32, #tpu.memory_space<vmem>>, vector<3x256xf32>
    tpu.vector_store %arg2[%c21, %c0_12], %22 {strides = array<i32>} : memref<63x256xf32, #tpu.memory_space<vmem>>, vector<3x256xf32>,
    %24 = math.cos %21 : vector<3x256xf32>
    %c24 = arith.constant 24 : index
    %c0_13 = arith.constant 0 : index
    %25 = vector.load %arg2[%c24, %c0_13] : memref<63x256xf32, #tpu.memory_space<vmem>>, vector<3x256xf32>
    tpu.vector_store %arg2[%c24, %c0_13], %24 {strides = array<i32>} : memref<63x256xf32, #tpu.memory_space<vmem>>, vector<3x256xf32>,
    %cst_14 = arith.constant 1.600000e+01 : f32
    %26 = vector.broadcast %cst_14 : f32 to vector<3x256xf32>
    %27 = arith.mulf %0, %26 : vector<3x256xf32>
    %28 = math.sin %27 : vector<3x256xf32>
    %c27 = arith.constant 27 : index
    %c0_15 = arith.constant 0 : index
    %29 = vector.load %arg2[%c27, %c0_15] : memref<63x256xf32, #tpu.memory_space<vmem>>, vector<3x256xf32>
    tpu.vector_store %arg2[%c27, %c0_15], %28 {strides = array<i32>} : memref<63x256xf32, #tpu.memory_space<vmem>>, vector<3x256xf32>,
    %30 = math.cos %27 : vector<3x256xf32>
    %c30 = arith.constant 30 : index
    %c0_16 = arith.constant 0 : index
    %31 = vector.load %arg2[%c30, %c0_16] : memref<63x256xf32, #tpu.memory_space<vmem>>, vector<3x256xf32>
    tpu.vector_store %arg2[%c30, %c0_16], %30 {strides = array<i32>} : memref<63x256xf32, #tpu.memory_space<vmem>>, vector<3x256xf32>,
    %cst_17 = arith.constant 3.200000e+01 : f32
    %32 = vector.broadcast %cst_17 : f32 to vector<3x256xf32>
    %33 = arith.mulf %0, %32 : vector<3x256xf32>
    %34 = math.sin %33 : vector<3x256xf32>
    %c33 = arith.constant 33 : index
    %c0_18 = arith.constant 0 : index
    %35 = vector.load %arg2[%c33, %c0_18] : memref<63x256xf32, #tpu.memory_space<vmem>>, vector<3x256xf32>
    tpu.vector_store %arg2[%c33, %c0_18], %34 {strides = array<i32>} : memref<63x256xf32, #tpu.memory_space<vmem>>, vector<3x256xf32>,
    %36 = math.cos %33 : vector<3x256xf32>
    %c36 = arith.constant 36 : index
    %c0_19 = arith.constant 0 : index
    %37 = vector.load %arg2[%c36, %c0_19] : memref<63x256xf32, #tpu.memory_space<vmem>>, vector<3x256xf32>
    tpu.vector_store %arg2[%c36, %c0_19], %36 {strides = array<i32>} : memref<63x256xf32, #tpu.memory_space<vmem>>, vector<3x256xf32>,
    %cst_20 = arith.constant 6.400000e+01 : f32
    %38 = vector.broadcast %cst_20 : f32 to vector<3x256xf32>
    %39 = arith.mulf %0, %38 : vector<3x256xf32>
    %40 = math.sin %39 : vector<3x256xf32>
    %c39 = arith.constant 39 : index
    %c0_21 = arith.constant 0 : index
    %41 = vector.load %arg2[%c39, %c0_21] : memref<63x256xf32, #tpu.memory_space<vmem>>, vector<3x256xf32>
    tpu.vector_store %arg2[%c39, %c0_21], %40 {strides = array<i32>} : memref<63x256xf32, #tpu.memory_space<vmem>>, vector<3x256xf32>,
    %42 = math.cos %39 : vector<3x256xf32>
    %c42 = arith.constant 42 : index
    %c0_22 = arith.constant 0 : index
    %43 = vector.load %arg2[%c42, %c0_22] : memref<63x256xf32, #tpu.memory_space<vmem>>, vector<3x256xf32>
    tpu.vector_store %arg2[%c42, %c0_22], %42 {strides = array<i32>} : memref<63x256xf32, #tpu.memory_space<vmem>>, vector<3x256xf32>,
    %cst_23 = arith.constant 1.280000e+02 : f32
    %44 = vector.broadcast %cst_23 : f32 to vector<3x256xf32>
    %45 = arith.mulf %0, %44 : vector<3x256xf32>
    %46 = math.sin %45 : vector<3x256xf32>
    %c45 = arith.constant 45 : index
    %c0_24 = arith.constant 0 : index
    %47 = vector.load %arg2[%c45, %c0_24] : memref<63x256xf32, #tpu.memory_space<vmem>>, vector<3x256xf32>
    tpu.vector_store %arg2[%c45, %c0_24], %46 {strides = array<i32>} : memref<63x256xf32, #tpu.memory_space<vmem>>, vector<3x256xf32>,
    %48 = math.cos %45 : vector<3x256xf32>
    %c48 = arith.constant 48 : index
    %c0_25 = arith.constant 0 : index
    %49 = vector.load %arg2[%c48, %c0_25] : memref<63x256xf32, #tpu.memory_space<vmem>>, vector<3x256xf32>
    tpu.vector_store %arg2[%c48, %c0_25], %48 {strides = array<i32>} : memref<63x256xf32, #tpu.memory_space<vmem>>, vector<3x256xf32>,
    %cst_26 = arith.constant 2.560000e+02 : f32
    %50 = vector.broadcast %cst_26 : f32 to vector<3x256xf32>
    %51 = arith.mulf %0, %50 : vector<3x256xf32>
    %52 = math.sin %51 : vector<3x256xf32>
    %c51 = arith.constant 51 : index
    %c0_27 = arith.constant 0 : index
    %53 = vector.load %arg2[%c51, %c0_27] : memref<63x256xf32, #tpu.memory_space<vmem>>, vector<3x256xf32>
    tpu.vector_store %arg2[%c51, %c0_27], %52 {strides = array<i32>} : memref<63x256xf32, #tpu.memory_space<vmem>>, vector<3x256xf32>,
    %54 = math.cos %51 : vector<3x256xf32>
    %c54 = arith.constant 54 : index
    %c0_28 = arith.constant 0 : index
    %55 = vector.load %arg2[%c54, %c0_28] : memref<63x256xf32, #tpu.memory_space<vmem>>, vector<3x256xf32>
    tpu.vector_store %arg2[%c54, %c0_28], %54 {strides = array<i32>} : memref<63x256xf32, #tpu.memory_space<vmem>>, vector<3x256xf32>,
    %cst_29 = arith.constant 5.120000e+02 : f32
    %56 = vector.broadcast %cst_29 : f32 to vector<3x256xf32>
    %57 = arith.mulf %0, %56 : vector<3x256xf32>
    %58 = math.sin %57 : vector<3x256xf32>
    %c57 = arith.constant 57 : index
    %c0_30 = arith.constant 0 : index
    %59 = vector.load %arg2[%c57, %c0_30] : memref<63x256xf32, #tpu.memory_space<vmem>>, vector<3x256xf32>
    tpu.vector_store %arg2[%c57, %c0_30], %58 {strides = array<i32>} : memref<63x256xf32, #tpu.memory_space<vmem>>, vector<3x256xf32>,
    %60 = math.cos %57 : vector<3x256xf32>
    %c60 = arith.constant 60 : index
    %c0_31 = arith.constant 0 : index
    %61 = vector.load %arg2[%c60, %c0_31] : memref<63x256xf32, #tpu.memory_space<vmem>>, vector<3x256xf32>
    tpu.vector_store %arg2[%c60, %c0_31], %60 {strides = array<i32>} : memref<63x256xf32, #tpu.memory_space<vmem>>, vector<3x256xf32>,
    return
  }
  func.func @transform_0(%arg0: i32) -> (i32, i32) {
    %c0_i32 = arith.constant 0 : i32
    %c0_i32_0 = arith.constant 0 : i32
    return %c0_i32, %arg0 : i32, i32
  }
  func.func @transform_1(%arg0: i32) -> (i32, i32) {
    %c0_i32 = arith.constant 0 : i32
    %c0_i32_0 = arith.constant 0 : i32
    return %c0_i32, %arg0 : i32, i32
  }
}

</mosaic_0001>

<bundles_post_ra>
// kernel: embedding_forward.1
= control target key start
LH: loop header
LB: loop body
LE: loop exit
PB: predicated region body
PF: predicated region fallthrough
CT: control target
= control target key end

     0   :  { %s3399_s0 = inlined_call_operand.vmem [shape: f32[3,256], index: 0, kind: input, shape index: {}]   ;;  %s3400_s1 = inlined_call_operand.hbm [shape: f32[63,256], index: 1, kind: output, shape index: {}]  }
   0x1   :  { %v2479_v0 = vld [vmem:[%s3399_s0] sm:$0x77] }
   0x2   :  { %13 = vst [vmem:[#allocation2] sm:$0x7] %v2479_v0  ;;  %v11_v1 = vcombine.high %v2479_v0, %v2479_v0  ;;  %v15_v2 = vand.u32 2147483647, %v2479_v0  ;;  %v18_v3 = vand.u32 2139095040, %v2479_v0 }
   0x3   :  { %6 = vsyncpa [#allocation3], 0  ;;  %v2487_v5 = vmul.f32 2.0, %v2479_v0  ;;  %v2492_v7 = vmul.f32 4.0, %v2479_v0  ;;  %v2457_v26 = vmov 683565275  }
   0x4   :  { %14 = vst [vmem:[#allocation2 + $0x8] sm:$0x7] %v11_v1  ;;  %v19_v4 = vshrl.u32 %v18_v3, 23  ;;  %v22_v6 = vand.u32 8388607, %v15_v2  ;;  %vm17_vm13 = vcmp.lt.s32.totalorder %v2479_v0, 0 }
   0x5   :  { %v241_v9 = vand.u32 2147483647, %v2487_v5  ;;  %v244_v10 = vand.u32 2139095040, %v2487_v5  ;;  %v465_v15 = vand.u32 2139095040, %v2492_v7  ;;  %v2458_v28 = vmov 2475754826  }
   0x6   :  { %v2265_v8 = vadd.s32 4294967169, %v19_v4  ;;  %v23_v13 = vor.u32 8388608, %v22_v6  ;;  %v2459_v30 = vmov 2131351028   ;;  %v2460_v32 = vmov 2102212464  }
   0x7   :  { %v248_v12 = vand.u32 8388607, %v241_v9  ;;  %v245_v14 = vshrl.u32 %v244_v10, 23  ;;  %v466_v19 = vshrl.u32 %v465_v15, 23  ;;  %v2461_v34 = vmov 920167782  }
   0x8   :  { %v25_v11 = vadd.s32 1, %v2265_v8  ;;  %v2499_v22 = vshll.u32 %v23_v13, 8  ;;  %v2462_v42 = vmov 1326507024   ;;  %vm2584_vm14 = vcmp.le.f32.partialorder %v15_v2, 0.7853982 }
   0x9   :  { %v249_v16 = vor.u32 8388608, %v248_v12  ;;  %v2273_v18 = vadd.s32 4294967169, %v245_v14  ;;  %v2281_v36 = vadd.s32 4294967169, %v466_v19  ;;  %s2463_s0 = smov [#allocation2]  }
   0xa   :  { %vm26_vm0 = vcmp.gt.s32.totalorder %v25_v11, 0  ;;  %s2254_s8 = sshll.u32 %s2463_s0, 4  ;;  %s2255_s8 = int_to_ptr.vmem [resolvable:$true] %s2254_s8 }
   0xb   :  { %v27_v17 = vsel %vm26_vm0, %v25_v11, 0  ;;  %v251_v23 = vadd.s32 1, %v2273_v18  ;;  %v2501_v24 = vshll.u32 %v249_v16, 8  ;;  %v472_v3 = vadd.s32 1, %v2281_v36  ;;  %s2435_s9 = scalar_lea.vmem %s2255_s8, 2048  ;;  %p2440_p1 = scmp.lt.s32.totalorder %s2255_s8, %s2255_s8 }
   0xc   :  { %v28_v20 = vshrl.u32 %v27_v17, 5  ;;  %v29_v21 = vand.u32 31, %v27_v17  ;;  %vm243_vm0 = vcmp.lt.s32.totalorder %v2487_v5, 0  ;;  %p2436_p0 = scmp.ne.s32.totalorder %s2255_s8, %s2435_s9  ;;  %p2441_p2 = scmp.lt.s32.totalorder %s2435_s9, %s2435_s9 }
   0xd   :  { %vm252_vm4 = vcmp.gt.s32.totalorder %v251_v23, 0  ;;  %vm473_vm11 = vcmp.gt.s32.totalorder %v472_v3, 0 }
   0xe   :  { %v30_v25 = vsub.s32 32, %v29_v21  ;;  %v32_v27 = vshll.u32 %v2457_v26, %v29_v21  ;;  %v35_v29 = vshll.u32 %v2458_v28, %v29_v21  ;;  %v38_v31 = vshll.u32 %v2459_v30, %v29_v21  ;;  %p2442_p3 = por %p2441_p2, %p2440_p1 }
   0xf   :  { %v41_v33 = vshll.u32 %v2460_v32, %v29_v21  ;;  %v44_v35 = vshll.u32 %v2461_v34, %v29_v21  ;;  %vm47_vm1 = vcmp.lt.s32.totalorder %v28_v20, 1  ;;  %vm48_vm2 = vcmp.lt.s32.totalorder %v28_v20, 2 }
  0x10   :  { %v31_v37 = vshrl.u32 %v2457_v26, %v30_v25  ;;  %v33_v38 = vshrl.u32 %v2458_v28, %v30_v25  ;;  %v36_v39 = vshrl.u32 %v2459_v30, %v30_v25  ;;  %v39_v40 = vshrl.u32 %v2460_v32, %v30_v25  ;;  %p2443_p4 = pnand %p2442_p3, %p2436_p0 }
  0x11   :  { %v42_v41 = vshrl.u32 %v2461_v34, %v30_v25  ;;  %v45_v43 = vshrl.u32 %v2462_v42, %v30_v25  ;;  %vm50_vm3 = vcmp.lt.s32.totalorder %v28_v20, 4  ;;  %vm49_vm5 = vcmp.lt.s32.totalorder %v28_v20, 3 }
  0x12   :  { %v34_v44 = vor.u32 %v33_v38, %v32_v27  ;;  %v37_v45 = vor.u32 %v36_v39, %v35_v29  ;;  %v40_v46 = vor.u32 %v39_v40, %v38_v31  ;;  %v253_v49 = vsel %vm252_vm4, %v251_v23, 0 }
  0x13   :  { %v43_v47 = vor.u32 %v42_v41, %v41_v33  ;;  %v46_v48 = vor.u32 %v45_v43, %v44_v35  ;;  %v254_v57 = vshrl.u32 %v253_v49, 5  ;;  %v255_v61 = vand.u32 31, %v253_v49 }
  0x14   :  { %v51_v50 = vsel %vm47_vm1, %v31_v37, %v34_v44  ;;  %v52_v51 = vsel %vm50_vm3, %v40_v46, 2102212464  ;;  %v55_v52 = vsel %vm47_vm1, %v34_v44, %v37_v45  ;;  %v59_v53 = vsel %vm47_vm1, %v37_v45, %v40_v46 }
  0x15   :  { %v53_v54 = vsel %vm49_vm5, %v37_v45, %v52_v51  ;;  %v56_v55 = vsel %vm50_vm3, %v43_v47, 920167782  ;;  %v60_v56 = vsel %vm50_vm3, %v46_v48, 1326507024  ;;  %v256_v11 = vsub.s32 32, %v255_v61 }
  0x16   :  { %v54_v58 = vsel %vm48_vm2, %v51_v50, %v53_v54  ;;  %v57_v59 = vsel %vm49_vm5, %v40_v46, %v56_v55  ;;  %v61_v60 = vsel %vm49_vm5, %v43_v47, %v60_v56  ;;  %v258_v12 = vshll.u32 %v2457_v26, %v255_v61 }
  0x17   :  { %v58_v62 = vsel %vm48_vm2, %v55_v52, %v57_v59  ;;  %v62_v63 = vsel %vm48_vm2, %v59_v53, %v61_v60  ;;  %v70_v1 = vmul.u32 %v2499_v22, %v54_v58  ;;  %v261_v13 = vshll.u32 %v2458_v28, %v255_v61 }
  0x18   :  { %v2522_v4 = vmul.u32.u64.low %v2499_v22, %v62_v63  ;;  %v2523_v6 = vmul.u32.u64.high %v2499_v22, %v62_v63, %v2522_v4  ;;  %v2526_v8 = vmul.u32.u64.low %v2499_v22, %v58_v62  ;;  %v2527_v10 = vmul.u32.u64.high %v2499_v22, %v58_v62, %v2526_v8 }
  0x19   :  { %v264_v14 = vshll.u32 %v2459_v30, %v255_v61  ;;  %v267_v15 = vshll.u32 %v2460_v32, %v255_v61  ;;  %v270_v16 = vshll.u32 %v2461_v34, %v255_v61  ;;  %vm273_vm6 = vcmp.lt.s32.totalorder %v254_v57, 1 }
  0x1a   :  { %vm274_vm7 = vcmp.lt.s32.totalorder %v254_v57, 2  ;;  %v257_v17 = vshrl.u32 %v2457_v26, %v256_v11  ;;  %v259_v18 = vshrl.u32 %v2458_v28, %v256_v11  ;;  %v262_v19 = vshrl.u32 %v2459_v30, %v256_v11 }
  0x1b   :  { %v265_v20 = vshrl.u32 %v2460_v32, %v256_v11  ;;  %vm72_vm8 = vc.u32 %v2523_v6, %v2526_v8  ;;  %v73_v21 = vadd.s32 1, %v2527_v10  ;;  %v268_v22 = vshrl.u32 %v2461_v34, %v256_v11 }
  0x1c   :  { %vm275_vm9 = vcmp.lt.s32.totalorder %v254_v57, 3  ;;  %v260_v23 = vor.u32 %v259_v18, %v258_v12  ;;  %v263_v25 = vor.u32 %v262_v19, %v261_v13  ;;  %v271_v29 = vshrl.u32 %v2462_v42, %v256_v11 }
  0x1d   :  { %v266_v27 = vor.u32 %v265_v20, %v264_v14  ;;  %v74_v31 = vsel %vm72_vm8, %v73_v21, %v2527_v10  ;;  %v269_v33 = vor.u32 %v268_v22, %v267_v15  ;;  %vm276_vm10 = vcmp.lt.s32.totalorder %v254_v57, 4 }
  0x1e   :  { %v75_v35 = vadd.s32 %v74_v31, %v70_v1  ;;  %v272_v36 = vor.u32 %v271_v29, %v270_v16  ;;  %v277_v37 = vsel %vm273_vm6, %v257_v17, %v260_v23  ;;  %v281_v40 = vsel %vm273_vm6, %v260_v23, %v263_v25 }
  0x1f   :  { %v278_v38 = vsel %vm276_vm10, %v266_v27, 2102212464  ;;  %v282_v41 = vsel %vm276_vm10, %v269_v33, 920167782  ;;  %v285_v43 = vsel %vm273_vm6, %v263_v25, %v266_v27  ;;  %v462_v47 = vand.u32 2147483647, %v2492_v7 }
  0x20   :  { %v279_v39 = vsel %vm275_vm9, %v263_v25, %v278_v38  ;;  %v76_v44 = vadd.s32 536870912, %v75_v35  ;;  %v283_v45 = vsel %vm275_vm9, %v266_v27, %v282_v41  ;;  %v286_v46 = vsel %vm276_vm10, %v272_v36, 1326507024 }
  0x21   :  { %v280_v48 = vsel %vm274_vm7, %v277_v37, %v279_v39  ;;  %v284_v49 = vsel %vm274_vm7, %v281_v40, %v283_v45  ;;  %v287_v50 = vsel %vm275_vm9, %v269_v33, %v286_v46  ;;  %v474_v51 = vsel %vm473_vm11, %v472_v3, 0 }
  0x22   :  { %v77_v52 = vshrl.u32 %v76_v44, 30  ;;  %v288_v53 = vsel %vm274_vm7, %v285_v43, %v287_v50  ;;  %v2557_v54 = vmul.u32.u64.low %v2501_v24, %v284_v49  ;;  %v2558_v55 = vmul.u32.u64.high %v2501_v24, %v284_v49, %v2557_v54 }
  0x23   :  { %v2561_v56 = vmul.u32.u64.low %v2501_v24, %v288_v53  ;;  %v2562_v58 = vmul.u32.u64.high %v2501_v24, %v288_v53, %v2561_v56  ;;  %v476_v60 = vand.u32 31, %v474_v51  ;;  %v296_v61 = vmul.u32 %v2501_v24, %v280_v48 }
  0x24   :  { %v78_v59 = vshll.u32 %v77_v52, 30  ;;  %v469_v62 = vand.u32 8388607, %v462_v47  ;;  %v299_v1 = vadd.s32 1, %v2558_v55  ;;  %v101_v57 = vsub.s32 4, %v77_v52 }
  0x25   :  { %vm298_vm12 = vc.u32 %v2562_v58, %v2557_v54  ;;  %v477_v10 = vsub.s32 32, %v476_v60  ;;  %v479_v24 = vshll.u32 %v2457_v26, %v476_v60  ;;  %v2573_v14 = vmul.f32 8.0, %v2479_v0 }
  0x26   :  { %v79_v63 = vsub.s32 %v75_v35, %v78_v59  ;;  %v300_v4 = vsel %vm298_vm12, %v299_v1, %v2558_v55  ;;  %v470_v12 = vor.u32 8388608, %v469_v62  ;;  %v102_v15 = vsel %vm17_vm13, %v101_v57, %v77_v52 }
  0x27   :  { %v301_v11 = vadd.s32 %v300_v4, %v296_v61  ;;  %v482_v17 = vshll.u32 %v2458_v28, %v476_v60  ;;  %v485_v18 = vshll.u32 %v2459_v30, %v476_v60  ;;  %v480_v20 = vshrl.u32 %v2458_v28, %v477_v10 }
  0x28   :  { %v81_v3 = vsub.s32 0, %v79_v63  ;;  %v483_v21 = vshrl.u32 %v2459_v30, %v477_v10  ;;  %v486_v22 = vshrl.u32 %v2460_v32, %v477_v10  ;;  %v71_v25 = vadd.s32 %v2526_v8, %v2523_v6 }
  0x29   :  { %v302_v16 = vadd.s32 536870912, %v301_v11  ;;  %v2590_v29 = vshll.u32 %v470_v12, 8  ;;  %v475_v33 = vshrl.u32 %v474_v51, 5  ;;  %v488_v35 = vshll.u32 %v2460_v32, %v476_v60 }
  0x2a   :  { %v2266_v13 = vmin.u32 %v81_v3, %v79_v63  ;;  %v489_v36 = vshrl.u32 %v2461_v34, %v477_v10  ;;  %v2596_v37 = vsel %vm2584_vm14, 0, %v102_v15  ;;  %v2599_v2 = vadd.s32 %v2557_v54, %v2562_v58 }
  0x2b   :  { %v303_v27 = vshrl.u32 %v302_v16, 30  ;;  %v691_v39 = vand.u32 2139095040, %v2573_v14  ;;  %v481_v6 = vor.u32 %v480_v20, %v479_v24  ;;  %v484_v8 = vor.u32 %v483_v21, %v482_v17 }
  0x2c   :  { %v83_v19 = vclz %v2266_v13  ;;  %v487_v40 = vor.u32 %v486_v22, %v485_v18  ;;  %v491_v44 = vshll.u32 %v2461_v34, %v476_v60  ;;  %v492_v45 = vshrl.u32 %v2462_v42, %v477_v10 }
  0x2d   :  { %v304_v38 = vshll.u32 %v303_v27, 30  ;;  %v490_v50 = vor.u32 %v489_v36, %v488_v35  ;;  %v478_v52 = vshrl.u32 %v2457_v26, %v477_v10  ;;  %vm494_vm1 = vcmp.lt.s32.totalorder %v475_v33, 1 }
  0x2e   :  { %v2267_v31 = vadd.s32 4294967294, %v83_v19  ;;  %vm497_vm2 = vcmp.lt.s32.totalorder %v475_v33, 4  ;;  %vm495_vm3 = vcmp.lt.s32.totalorder %v475_v33, 2  ;;  %v327_v58 = vsub.s32 4, %v303_v27 }
  0x2f   :  { %v2603_v43 = vsub.s32 %v301_v11, %v304_v38  ;;  %v499_v55 = vsel %vm497_vm2, %v487_v40, 2102212464  ;;  %v493_v59 = vor.u32 %v492_v45, %v491_v44  ;;  %vm496_vm4 = vcmp.lt.s32.totalorder %v475_v33, 3 }
  0x30   :  { %vm2268_vm15 = vcmp.lt.s32.totalorder %v2267_v31, 0  ;;  %vm2613_vm5 = vcmp.le.f32.partialorder %v241_v9, 0.7853982  ;;  %v503_v1 = vsel %vm497_vm2, %v490_v50, 920167782  ;;  %v108_v57 = vadd.s32 3, %v2596_v37 }
  0x31   :  { %v86_v41 = vsel %vm2268_vm15, 0, %v2267_v31  ;;  %v307_v51 = vsub.s32 0, %v2603_v43  ;;  %v498_v4 = vsel %vm494_vm1, %v478_v52, %v481_v6  ;;  %v500_v10 = vsel %vm496_vm4, %v484_v8, %v499_v55 }
  0x32   :  { %v87_v46 = vsub.s32 32, %v86_v41  ;;  %v88_v48 = vshll.u32 %v79_v63, %v86_v41  ;;  %v91_v49 = vsub.s32 4294967266, %v86_v41  ;;  %v502_v63 = vsel %vm494_vm1, %v481_v6, %v484_v8 }
  0x33   :  { %v2274_v56 = vmin.u32 %v307_v51, %v2603_v43  ;;  %v504_v13 = vsel %vm496_vm4, %v487_v40, %v503_v1  ;;  %v506_v9 = vsel %vm494_vm1, %v484_v8, %v487_v40  ;;  %v328_v15 = vsel %vm243_vm0, %v327_v58, %v303_v27 }
  0x34   :  { %v89_v53 = vshrl.u32 %v71_v25, %v87_v46  ;;  %v92_v54 = vadd.s32 127, %v91_v49  ;;  %v505_v16 = vsel %vm495_vm3, %v502_v63, %v504_v13  ;;  %v507_v17 = vsel %vm497_vm2, %v493_v59, 1326507024 }
  0x35   :  { %v309_v3 = vclz %v2274_v56  ;;  %v508_v19 = vsel %vm496_vm4, %v490_v50, %v507_v17  ;;  %v2630_v20 = vmul.u32.u64.low %v2590_v29, %v505_v16  ;;  %v2631_v21 = vmul.u32.u64.high %v2590_v29, %v505_v16, %v2630_v20 }
  0x36   :  { %v90_v60 = vor.u32 %v89_v53, %v88_v48  ;;  %v93_v61 = vshll.u32 %v92_v54, 23  ;;  %v501_v22 = vsel %vm495_vm3, %v498_v4, %v500_v10  ;;  %v509_v25 = vsel %vm495_vm3, %v506_v9, %v508_v19 }
  0x37   :  { %v2275_v24 = vadd.s32 4294967294, %v309_v3  ;;  %v692_v31 = vshrl.u32 %v691_v39, 23  ;;  %v2637_v36 = vmul.u32.u64.low %v2590_v29, %v509_v25  ;;  %v2638_v38 = vmul.u32.u64.high %v2590_v29, %v509_v25, %v2637_v36 }
  0x38   :  { %v94_v11 = vor.u32 4788187, %v93_v61  ;;  %v97_v12 = vcvt.s32.f32 %v90_v60  ;;  %v517_v45 = vmul.u32 %v2590_v29, %v501_v22  ;;  %v520_v46 = vadd.s32 1, %v2631_v21 }
  0x39   :  { %vm2276_vm6 = vcmp.lt.s32.totalorder %v2275_v24, 0  ;;  %v2289_v41 = vadd.s32 4294967169, %v692_v31  ;;  %v688_v33 = vand.u32 2147483647, %v2573_v14  ;;  %v330_v49 = vsel %vm2613_vm5, 0, %v328_v15 }
  0x3a   :  { %v95_v18 = vand.u32 2147483647, %v94_v11  ;;  %v312_v27 = vsel %vm2276_vm6, 0, %v2275_v24  ;;  %v2652_v52 = vand.u32 3, %v2596_v37  ;;  %vm519_vm7 = vc.u32 %v2638_v38, %v2630_v20 }
  0x3b   :  { %v313_v6 = vsub.s32 32, %v312_v27  ;;  %v314_v8 = vshll.u32 %v2603_v43, %v312_v27  ;;  %v317_v40 = vsub.s32 4294967266, %v312_v27  ;;  %v698_v50 = vadd.s32 1, %v2289_v41 }
  0x3c   :  { %v98_v35 = vmul.f32 %v97_v12, %v95_v18  ;;  %v2649_v43 = vand.u32 3, %v108_v57  ;;  %v521_v54 = vsel %vm519_vm7, %v520_v46, %v2631_v21  ;;  %v334_v55 = vadd.s32 3, %v330_v49 }
  0x3d   :  { %v315_v39 = vshrl.u32 %v2599_v2, %v313_v6  ;;  %v318_v48 = vadd.s32 127, %v317_v40  ;;  %v522_v56 = vadd.s32 %v521_v54, %v517_v45  ;;  %vm699_vm8 = vcmp.gt.s32.totalorder %v698_v50, 0 }
  0x3e   :  { %v99_v44 = vxor.u32 2147483648, %v98_v35  ;;  %v700_v37 = vsel %vm699_vm8, %v698_v50, 0  ;;  %v695_v61 = vand.u32 8388607, %v688_v33  ;;  %v2663_v23 = vmul.f32 16.0, %v2479_v0 }
  0x3f   :  { %v316_v2 = vor.u32 %v315_v39, %v314_v8  ;;  %v319_v53 = vshll.u32 %v318_v48, 23  ;;  %v523_v60 = vadd.s32 536870912, %v522_v56  ;;  %v702_v63 = vand.u32 31, %v700_v37 }
  0x40   :  { %v100_v51 = vsel %vm17_vm13, %v99_v44, %v98_v35  ;;  %vm2667_vm9 = vcmp.le.f32.partialorder %v462_v47, 0.7853982  ;;  %vm3401_vm10 = vcmp.lt.s32.totalorder %v2492_v7, 0  ;;  %vm114_vm11 = vcmp.eq.s32.totalorder %v2649_v43, 2 }
  0x41   :  { %v103_v29 = vsel %vm2584_vm14, %v2479_v0, %v100_v51  ;;  %v320_v58 = vor.u32 4788187, %v319_v53  ;;  %v323_v59 = vcvt.s32.f32 %v316_v2  ;;  %v524_v3 = vshrl.u32 %v523_v60, 30 }
  0x42   :  { %2395 = vcosq.f32 %v103_v29  ;;  %v703_v4 = vsub.s32 32, %v702_v63  ;;  %vm225_vm12 = vcmp.eq.s32.totalorder %v2652_v52, 2  ;;  %v2674_v11 = vand.u32 3, %v334_v55 }
  0x43   :  { %2397 = vsinq.f32 %v103_v29  ;;  %v321_v1 = vand.u32 2147483647, %v320_v58  ;;  %v2676_v12 = vand.u32 3, %v330_v49  ;;  %vm111_vm13 = vcmp.eq.s32.totalorder %v2649_v43, 0 }
  0x44   :  { %vm222_vm14 = vcmp.eq.s32.totalorder %v2652_v52, 0  ;;  %v525_v47 = vshll.u32 %v524_v3, 30  ;;  %v548_v13 = vsub.s32 4, %v524_v3  ;;  %v696_v9 = vor.u32 8388608, %v695_v61 }
  0x45   :  { %v324_v10 = vmul.f32 %v323_v59, %v321_v1  ;;  %v2680_v24 = vshrl.u32 %v700_v37, 5  ;;  %vm110_vm15 = vcmp.lt.s32.totalorder %v2649_v43, 2  ;;  %vm221_vm1 = vcmp.lt.s32.totalorder %v2652_v52, 2 }
  0x46   :  { %v705_v16 = vshll.u32 %v2457_v26, %v702_v63  ;;  %v708_v17 = vshll.u32 %v2458_v28, %v702_v63  ;;  %v711_v18 = vshll.u32 %v2459_v30, %v702_v63  ;;  %vm107_vm2 = vweird.f32 %v2479_v0 }
  0x47   :  { %v325_v15 = vxor.u32 2147483648, %v324_v10  ;;  %v2688_v19 = vsub.s32 %v522_v56, %v525_v47  ;;  %v706_v21 = vshrl.u32 %v2458_v28, %v703_v4  ;;  %v714_v22 = vshll.u32 %v2460_v32, %v702_v63 }
  0x48   :  { %v2693_v25 = vshll.u32 %v2461_v34, %v702_v63  ;;  %v709_v35 = vshrl.u32 %v2459_v30, %v703_v4  ;;  %v712_v27 = vshrl.u32 %v2460_v32, %v703_v4  ;;  %v715_v36 = vshrl.u32 %v2461_v34, %v703_v4 }
  0x49   :  { %v326_v31 = vsel %vm243_vm0, %v325_v15, %v324_v10  ;;  %v528_v8 = vsub.s32 0, %v2688_v19  ;;  %v549_v40 = vsel %vm3401_vm10, %v548_v13, %v524_v3  ;;  %v2707_v41 = vshrl.u32 %v2462_v42, %v703_v4 }
  0x4a   :  { %v329_v6 = vsel %vm2613_vm5, %v2487_v5, %v326_v31  ;;  %v518_v44 = vadd.s32 %v2630_v20, %v2638_v38  ;;  %v2711_v45 = vshll.u32 %v696_v9, 8  ;;  %v912_v46 = vand.u32 2139095040, %v2663_v23 }
  0x4b   :  { %2399 = vcosq.f32 %v329_v6  ;;  %v2282_v62 = vmin.u32 %v528_v8, %v2688_v19  ;;  %v704_v39 = vshrl.u32 %v2457_v26, %v703_v4  ;;  %v707_v48 = vor.u32 %v706_v21, %v705_v16 }
  0x4c   :  { %2401 = vsinq.f32 %v329_v6  ;;  %v2718_v50 = vsel %vm2667_vm9, 0, %v549_v40  ;;  %v710_v51 = vor.u32 %v709_v35, %v708_v17  ;;  %v713_v29 = vor.u32 %v712_v27, %v711_v18 }
  0x4d   :  { %v716_v2 = vor.u32 %v715_v36, %v714_v22  ;;  %v530_v38 = vclz %v2282_v62  ;;  %v719_v54 = vor.u32 %v2707_v41, %v2693_v25  ;;  %vm720_vm0 = vcmp.lt.s32.totalorder %v2680_v24, 1 }
  0x4e   :  { %vm721_vm3 = vcmp.lt.s32.totalorder %v2680_v24, 2  ;;  %vm722_vm4 = vcmp.lt.s32.totalorder %v2680_v24, 3  ;;  %vm723_vm5 = vcmp.lt.s32.totalorder %v2680_v24, 4  ;;  %vm340_vm6 = vcmp.eq.s32.totalorder %v2674_v11, 2 }
  0x4f   :  { %v2396_v49 = vpop.eup %2395  ;;  %vm451_vm7 = vcmp.eq.s32.totalorder %v2676_v12, 2  ;;  %v2283_v59 = vadd.s32 4294967294, %v530_v38  ;;  %v725_v37 = vsel %vm723_vm5, %v713_v29, 2102212464  ;;  %vm337_vm8 = vcmp.eq.s32.totalorder %v2674_v11, 0 }
  0x50   :  { %v2398_v53 = vpop.eup %2397  ;;  %v115_v20 = vxor.u32 2147483648, %v2396_v49  ;;  %v724_v63 = vsel %vm720_vm0, %v704_v39, %v707_v48  ;;  %v726_v1 = vsel %vm722_vm4, %v710_v51, %v725_v37  ;;  %v728_v10 = vsel %vm720_vm0, %v707_v48, %v710_v51 }
  0x51   :  { %v112_v55 = vxor.u32 2147483648, %v2398_v53  ;;  %vm333_vm10 = vweird.f32 %v2487_v5  ;;  %v729_v52 = vsel %vm723_vm5, %v716_v2, 920167782  ;;  %v732_v36 = vsel %vm720_vm0, %v710_v51, %v713_v29 }
  0x52   :  { %v116_v56 = vsel %vm114_vm11, %v115_v20, %v2398_v53  ;;  %v227_v58 = vsel %vm225_vm12, %v115_v20, %v2398_v53  ;;  %vm448_vm11 = vcmp.eq.s32.totalorder %v2676_v12, 0  ;;  %vm336_vm12 = vcmp.lt.s32.totalorder %v2674_v11, 2 }
  0x53   :  { %v113_v60 = vsel %vm111_vm13, %v2396_v49, %v112_v55  ;;  %v224_v61 = vsel %vm222_vm14, %v2396_v49, %v112_v55  ;;  %vm447_vm13 = vcmp.lt.s32.totalorder %v2676_v12, 2  ;;  %vm2284_vm14 = vcmp.lt.s32.totalorder %v2283_v59, 0 }
  0x54   :  { %v117_v3 = vsel %vm110_vm15, %v113_v60, %v116_v56  ;;  %v228_v4 = vsel %vm221_vm1, %v224_v61, %v227_v58  ;;  %v533_v43 = vsel %vm2284_vm14, 0, %v2283_v59  ;;  %v730_v25 = vsel %vm722_vm4, %v713_v29, %v729_v52 }
  0x55   :  { %v118_v47 = vsel %vm107_vm2, nan, %v117_v3  ;;  %v229_v13 = vsel %vm107_vm2, nan, %v228_v4  ;;  %v534_v18 = vsub.s32 32, %v533_v43  ;;  %v535_v21 = vshll.u32 %v2688_v19, %v533_v43 }
  0x56   :  { %v121_v9 = vrot.slane %v118_v47, 5  ;;  %v120_v15 = vcombine.high %v118_v47, %v118_v47  ;;  %v232_v16 = vrot.slane %v229_v13, 2  ;;  %v231_v17 = vcombine.high %v229_v13, %v229_v13 }
  0x57   :  { %v538_v22 = vsub.s32 4294967266, %v533_v43  ;;  %v731_v27 = vsel %vm721_vm3, %v728_v10, %v730_v25  ;;  %v536_v6 = vshrl.u32 %v518_v44, %v534_v18  ;;  %v727_v40 = vsel %vm721_vm3, %v724_v63, %v726_v1 }
  0x58   :  { %125 = vst [vmem:[#allocation2] sm:$0x38] %v121_v9  ;;  %v122_v31 = vrot.slane %v120_v15, 5  ;;  %236 = vst [vmem:[#allocation2 + $0x10] ss:$-12 sps:$4 sm:$0xc1] %v232_v16   ;;  %v2400_v41 = vpop.eup %2399  ;;  %v2773_v39 = vmul.u32.u64.low %v2711_v45, %v731_v27  ;;  %v2774_v48 = vmul.u32.u64.high %v2711_v45, %v731_v27, %v2773_v39  ;;  %v743_v60 = vmul.u32 %v2711_v45, %v727_v40 }
  0x59   :  { %v233_v35 = vrot.slane %v231_v17, 2  ;;  %v539_v8 = vadd.s32 127, %v538_v22  ;;  %v733_v19 = vsel %vm723_vm5, %v719_v54, 1326507024  ;;  %v913_v44 = vshrl.u32 %v912_v46, 23  ;;  %v2402_v49 = vpop.eup %2401 }
  0x5a   :  { %126 = vst [vmem:[#allocation2 + $0x8] sm:$0x38] %v122_v31  ;;  %v734_v62 = vsel %vm722_vm4, %v716_v2, %v733_v19  ;;  %v341_v51 = vxor.u32 2147483648, %v2400_v41  ;;  %v537_v29 = vor.u32 %v536_v6, %v535_v21  ;;  %v338_v38 = vxor.u32 2147483648, %v2402_v49 }
  0x5b   :  { %237 = vst [vmem:[#allocation2 + $0x18] ss:$-12 sps:$4 sm:$0xc1] %v233_v35   ;;  %v540_v53 = vshll.u32 %v539_v8, 23  ;;  %v735_v20 = vsel %vm721_vm3, %v732_v36, %v734_v62  ;;  %v2297_v2 = vadd.s32 4294967169, %v913_v44  ;;  %v746_v61 = vadd.s32 1, %v2774_v48 }
  0x5c   :  { %v2782_v54 = vmul.u32.u64.low %v2711_v45, %v735_v20  ;;  %v2783_v55 = vmul.u32.u64.high %v2711_v45, %v735_v20, %v2782_v54  ;;  %v342_v56 = vsel %vm340_vm6, %v341_v51, %v2402_v49  ;;  %v453_v58 = vsel %vm451_vm7, %v341_v51, %v2402_v49 }
  0x5d   :  { %v541_v46 = vor.u32 4788187, %v540_v53  ;;  %v544_v59 = vcvt.s32.f32 %v537_v29  ;;  %v339_v37 = vsel %vm337_vm8, %v2400_v41, %v338_v38  ;;  %v450_v24 = vsel %vm448_vm11, %v2400_v41, %v338_v38 }
  0x5e   :  { %v343_v63 = vsel %vm336_vm12, %v339_v37, %v342_v56  ;;  %v454_v1 = vsel %vm447_vm13, %v450_v24, %v453_v58  ;;  %v919_v4 = vadd.s32 1, %v2297_v2  ;;  %vm745_vm15 = vc.u32 %v2783_v55, %v2773_v39 }
  0x5f   :  { %v542_v3 = vand.u32 2147483647, %v541_v46  ;;  %v344_v10 = vsel %vm333_vm10, nan, %v343_v63  ;;  %v455_v47 = vsel %vm333_vm10, nan, %v454_v1  ;;  %v909_v45 = vand.u32 2147483647, %v2663_v23 }
  0x60   :  { %v347_v13 = vrot.slane %v344_v10, 7  ;;  %v346_v43 = vcombine.high %v344_v10, %v344_v10  ;;  %v457_v11 = vcombine.low %v455_v47, %v455_v47  ;;  %460 = vst [vmem:[#allocation2 + $0x18] sm:$0x70] %v455_v47  ;;  %v555_v12 = vadd.s32 3, %v2718_v50 }
  0x61   :  { %v545_v52 = vmul.f32 %v544_v59, %v542_v3  ;;  %v747_v9 = vsel %vm745_vm15, %v746_v61, %v2774_v48  ;;  %vm920_vm1 = vcmp.gt.s32.totalorder %v919_v4, 0  ;;  %v916_v18 = vand.u32 8388607, %v909_v45 }
  0x62   :  { %351 = vst [vmem:[#allocation2 + $0x10] sm:$0xe] %v347_v13  ;;  %v348_v15 = vrot.slane %v346_v43, 7  ;;  %459 = vst [vmem:[#allocation2 + $0x10] sm:$0x70] %v457_v11  ;;  %v748_v16 = vadd.s32 %v747_v9, %v743_v60  ;;  %v921_v17 = vsel %vm920_vm1, %v919_v4, 0  ;;  %vm554_vm8 = vweird.f32 %v2492_v7 }
  0x63   :  { %v546_v5 = vxor.u32 2147483648, %v545_v52  ;;  %v923_v21 = vand.u32 31, %v921_v17  ;;  %vm3408_vm10 = vcmp.lt.s32.totalorder %v2492_v7, 0  ;;  %v2813_v25 = vand.u32 3, %v2718_v50 }
  0x64   :  { %352 = vst [vmem:[#allocation2 + $0x18] sm:$0xe] %v348_v15  ;;  %v749_v31 = vadd.s32 536870912, %v748_v16  ;;  %v2816_v35 = vmul.f32 32.0, %v2479_v0  ;;  %v2821_v36 = vand.u32 3, %v555_v12  ;;  %v2823_v6 = vshrl.u32 %v921_v17, 5 }
  0x65   :  { %v547_v22 = vsel %vm3408_vm10, %v546_v5, %v545_v52  ;;  %v924_v8 = vsub.s32 32, %v923_v21  ;;  %v926_v19 = vshll.u32 %v2457_v26, %v923_v21  ;;  %v929_v50 = vshll.u32 %v2458_v28, %v923_v21 }
  0x66   :  { %v550_v27 = vsel %vm2667_vm9, %v2492_v7, %v547_v22  ;;  %v2825_v40 = vshrl.u32 %v749_v31, 30  ;;  %v935_v57 = vshll.u32 %v2460_v32, %v923_v21  ;;  %v932_v44 = vshll.u32 %v2459_v30, %v923_v21 }
  0x67   :  { %2403 = vcosq.f32 %v550_v27  ;;  %v927_v41 = vshrl.u32 %v2458_v28, %v924_v8  ;;  %v930_v62 = vshrl.u32 %v2459_v30, %v924_v8  ;;  %v933_v49 = vshrl.u32 %v2460_v32, %v924_v8 }
  0x68   :  { %2405 = vsinq.f32 %v550_v27  ;;  %v751_v48 = vshll.u32 %v2825_v40, 30  ;;  %v936_v51 = vshrl.u32 %v2461_v34, %v924_v8  ;;  %v938_v29 = vshll.u32 %v2461_v34, %v923_v21 }
  0x69   :  { %v939_v53 = vshrl.u32 %v2462_v42, %v924_v8  ;;  %v917_v38 = vor.u32 8388608, %v916_v18  ;;  %vm674_vm9 = vcmp.eq.s32.totalorder %v2813_v25, 2  ;;  %v928_v54 = vor.u32 %v927_v41, %v926_v19 }
  0x6a   :  { %v2838_v20 = vsub.s32 %v748_v16, %v751_v48  ;;  %v931_v2 = vor.u32 %v930_v62, %v929_v50  ;;  %v937_v56 = vor.u32 %v936_v51, %v935_v57  ;;  %v1138_v58 = vand.u32 2139095040, %v2816_v35 }
  0x6b   :  { %vm558_vm2 = vcmp.eq.s32.totalorder %v2821_v36, 0  ;;  %vm671_vm0 = vcmp.eq.s32.totalorder %v2813_v25, 0  ;;  %v934_v59 = vor.u32 %v933_v49, %v932_v44  ;;  %vm941_vm3 = vcmp.lt.s32.totalorder %v2823_v6, 1 }
  0x6c   :  { %v754_v46 = vsub.s32 0, %v2838_v20  ;;  %vm557_vm4 = vcmp.lt.s32.totalorder %v2821_v36, 2  ;;  %vm561_vm5 = vcmp.eq.s32.totalorder %v2821_v36, 2  ;;  %vm670_vm6 = vcmp.lt.s32.totalorder %v2813_v25, 2 }
  0x6d   :  { %v925_v37 = vshrl.u32 %v2457_v26, %v924_v8  ;;  %v940_v24 = vor.u32 %v939_v53, %v938_v29  ;;  %vm944_vm7 = vcmp.lt.s32.totalorder %v2823_v6, 4  ;;  %vm942_vm11 = vcmp.lt.s32.totalorder %v2823_v6, 2 }
  0x6e   :  { %v2290_v60 = vmin.u32 %v754_v46, %v2838_v20  ;;  %vm943_vm12 = vcmp.lt.s32.totalorder %v2823_v6, 3  ;;  %v957_v61 = vshll.u32 %v917_v38, 8  ;;  %v946_v63 = vsel %vm944_vm7, %v934_v59, 2102212464 }
  0x6f   :  { %v949_v1 = vsel %vm941_vm3, %v928_v54, %v931_v2  ;;  %v950_v3 = vsel %vm944_vm7, %v937_v56, 920167782  ;;  %v1139_v4 = vshrl.u32 %v1138_v58, 23  ;;  %v744_v10 = vadd.s32 %v2773_v39, %v2783_v55 }
  0x70   :  { %v756_v47 = vclz %v2290_v60  ;;  %v953_v13 = vsel %vm941_vm3, %v931_v2, %v934_v59  ;;  %v1135_v43 = vand.u32 2147483647, %v2816_v35  ;;  %v945_v11 = vsel %vm941_vm3, %v925_v37, %v928_v54 }
  0x71   :  { %v951_v52 = vsel %vm943_vm12, %v934_v59, %v950_v3  ;;  %v954_v12 = vsel %vm944_vm7, %v940_v24, 1326507024  ;;  %v2305_v9 = vadd.s32 4294967169, %v1139_v4  ;;  %v947_v39 = vsel %vm943_vm12, %v931_v2, %v946_v63 }
  0x72   :  { %v2291_v15 = vadd.s32 4294967294, %v756_v47  ;;  %v952_v55 = vsel %vm942_vm11, %v949_v1, %v951_v52  ;;  %v955_v5 = vsel %vm943_vm12, %v937_v56, %v954_v12  ;;  %v774_v17 = vsub.s32 4, %v2825_v40 }
  0x73   :  { %v956_v18 = vsel %vm942_vm11, %v953_v13, %v955_v5  ;;  %v2881_v21 = vmul.u32.u64.low %v957_v61, %v952_v55  ;;  %v2882_v22 = vmul.u32.u64.high %v957_v61, %v952_v55, %v2881_v21  ;;  %vm690_vm13 = vcmp.lt.s32.totalorder %v2573_v14, 0 }
  0x74   :  { %v2404_v16 = vpop.eup %2403  ;;  %vm2292_vm14 = vcmp.lt.s32.totalorder %v2291_v15, 0  ;;  %v2886_v8 = vmul.u32.u64.low %v957_v61, %v956_v18  ;;  %v2887_v19 = vmul.u32.u64.high %v957_v61, %v956_v18, %v2886_v8  ;;  %v948_v62 = vsel %vm942_vm11, %v945_v11, %v947_v39 }
  0x75   :  { %v2406_v31 = vpop.eup %2405  ;;  %v562_v27 = vxor.u32 2147483648, %v2404_v16  ;;  %v759_v41 = vsel %vm2292_vm14, 0, %v2291_v15  ;;  %v1145_v57 = vadd.s32 1, %v2305_v9  ;;  %v967_v6 = vadd.s32 1, %v2882_v22 }
  0x76   :  { %v559_v50 = vxor.u32 2147483648, %v2406_v31  ;;  %v760_v49 = vsub.s32 32, %v759_v41  ;;  %v761_v51 = vshll.u32 %v2838_v20, %v759_v41  ;;  %v764_v38 = vsub.s32 4294967266, %v759_v41 }
  0x77   :  { %v563_v48 = vsel %vm561_vm5, %v562_v27, %v2406_v31  ;;  %v676_v44 = vsel %vm674_vm9, %v562_v27, %v2406_v31  ;;  %v964_v58 = vmul.u32 %v957_v61, %v948_v62  ;;  %vm966_vm15 = vc.u32 %v2887_v19, %v2881_v21 }
  0x78   :  { %v560_v29 = vsel %vm558_vm2, %v2404_v16, %v559_v50  ;;  %v673_v53 = vsel %vm671_vm0, %v2404_v16, %v559_v50  ;;  %v762_v56 = vshrl.u32 %v744_v10, %v760_v49  ;;  %v765_v59 = vadd.s32 127, %v764_v38 }
  0x79   :  { %v564_v54 = vsel %vm557_vm4, %v560_v29, %v563_v48  ;;  %v677_v2 = vsel %vm670_vm6, %v673_v53, %v676_v44  ;;  %v968_v25 = vsel %vm966_vm15, %v967_v6, %v2882_v22  ;;  %vm1146_vm1 = vcmp.gt.s32.totalorder %v1145_v57, 0 }
  0x7a   :  { %v565_v20 = vsel %vm554_vm8, nan, %v564_v54  ;;  %v678_v46 = vsel %vm554_vm8, nan, %v677_v2  ;;  %v763_v63 = vor.u32 %v762_v56, %v761_v51  ;;  %v766_v1 = vshll.u32 %v765_v59, 23 }
  0x7b   :  { %v568_v37 = vrot.slane %v565_v20, 1  ;;  %v567_v24 = vcombine.high %v565_v20, %v565_v20  ;;  %v681_v60 = vrot.slane %v678_v46, 6  ;;  %v680_v36 = vcombine.high %v678_v46, %v678_v46 }
  0x7c   :  { %v969_v4 = vadd.s32 %v968_v25, %v964_v58  ;;  %v1147_v7 = vsel %vm1146_vm1, %v1145_v57, 0  ;;  %v767_v10 = vor.u32 4788187, %v766_v1  ;;  %v770_v47 = vcvt.s32.f32 %v763_v63 }
  0x7d   :  { %572 = vst [vmem:[#allocation2 + $0x20] ss:$-12 sps:$4 sm:$0x83] %v568_v37   ;;  %v569_v61 = vrot.slane %v567_v24, 1  ;;  %685 = vst [vmem:[#allocation2 + $0x20] sm:$0x1c] %v681_v60  ;;  %v775_v13 = vsel %vm690_vm13, %v774_v17, %v2825_v40  ;;  %vm780_vm6 = vweird.f32 %v2573_v14 }
  0x7e   :  { %v682_v3 = vrot.slane %v680_v36, 6  ;;  %v1149_v11 = vand.u32 31, %v1147_v7  ;;  %v970_v52 = vadd.s32 536870912, %v969_v4  ;;  %vm2917_vm10 = vcmp.le.f32.partialorder %v688_v33, 0.7853982 }
  0x7f   :  { %573 = vst [vmem:[#allocation2 + $0x28] ss:$-12 sps:$4 sm:$0x83] %v569_v61   ;;  %v768_v9 = vand.u32 2147483647, %v767_v10  ;;  %v777_v39 = vsel %vm2917_vm10, 0, %v775_v13 }
  0x80   :  { %686 = vst [vmem:[#allocation2 + $0x28] sm:$0x1c] %v682_v3  ;;  %v1150_v15 = vsub.s32 32, %v1149_v11  ;;  %v2923_v55 = vshrl.u32 %v970_v52, 30  ;;  %v1142_v40 = vand.u32 8388607, %v1135_v43  ;;  %v1152_v5 = vshll.u32 %v2457_v26, %v1149_v11 }
  0x81   :  { %v771_v16 = vmul.f32 %v770_v47, %v768_v9  ;;  %v1155_v17 = vshll.u32 %v2458_v28, %v1149_v11  ;;  %v1158_v33 = vshll.u32 %v2459_v30, %v1149_v11  ;;  %v1161_v18 = vshll.u32 %v2460_v32, %v1149_v11 }
  0x82   :  { %v972_v22 = vshll.u32 %v2923_v55, 30  ;;  %v1153_v31 = vshrl.u32 %v2458_v28, %v1150_v15  ;;  %v1156_v27 = vshrl.u32 %v2459_v30, %v1150_v15  ;;  %v1164_v8 = vshll.u32 %v2461_v34, %v1149_v11 }
  0x83   :  { %v772_v50 = vxor.u32 2147483648, %v771_v16  ;;  %v1159_v41 = vshrl.u32 %v2460_v32, %v1150_v15  ;;  %v1162_v62 = vshrl.u32 %v2461_v34, %v1150_v15  ;;  %v1165_v57 = vshrl.u32 %v2462_v42, %v1150_v15 }
  0x84   :  { %v2938_v48 = vsub.s32 %v969_v4, %v972_v22  ;;  %v1148_v44 = vshrl.u32 %v1147_v7, 5  ;;  %v781_v51 = vadd.s32 3, %v777_v39  ;;  %v1143_v29 = vor.u32 8388608, %v1142_v40 }
  0x85   :  { %v773_v49 = vsel %vm690_vm13, %v772_v50, %v771_v16  ;;  %v1151_v53 = vshrl.u32 %v2457_v26, %v1150_v15  ;;  %v1154_v54 = vor.u32 %v1153_v31, %v1152_v5  ;;  %v1157_v2 = vor.u32 %v1156_v27, %v1155_v17 }
  0x86   :  { %v776_v38 = vsel %vm2917_vm10, %v2573_v14, %v773_v49  ;;  %v975_v6 = vsub.s32 0, %v2938_v48  ;;  %v1160_v56 = vor.u32 %v1159_v41, %v1158_v33  ;;  %v1163_v58 = vor.u32 %v1162_v62, %v1161_v18 }
  0x87   :  { %2407 = vcosq.f32 %v776_v38  ;;  %v1166_v20 = vor.u32 %v1165_v57, %v1164_v8  ;;  %vm1167_vm9 = vcmp.lt.s32.totalorder %v1148_v44, 1  ;;  %vm1170_vm2 = vcmp.lt.s32.totalorder %v1148_v44, 4 }
  0x88   :  { %2409 = vsinq.f32 %v776_v38  ;;  %v2298_v46 = vmin.u32 %v975_v6, %v2938_v48  ;;  %v2948_v59 = vand.u32 3, %v781_v51  ;;  %v2950_v37 = vand.u32 3, %v777_v39 }
  0x89   :  { %vm1169_vm0 = vcmp.lt.s32.totalorder %v1148_v44, 3  ;;  %v1172_v24 = vsel %vm1170_vm2, %v1160_v56, 2102212464  ;;  %vm911_vm3 = vcmp.lt.s32.totalorder %v2663_v23, 0  ;;  %vm1168_vm4 = vcmp.lt.s32.totalorder %v1148_v44, 2 }
  0x8a   :  { %v977_v60 = vclz %v2298_v46  ;;  %v1171_v36 = vsel %vm1167_vm9, %v1151_v53, %v1154_v54  ;;  %v1183_v63 = vshll.u32 %v1143_v29, 8  ;;  %v1173_v1 = vsel %vm1169_vm0, %v1157_v2, %v1172_v24 }
  0x8b   :  { %v1175_v25 = vsel %vm1167_vm9, %v1154_v54, %v1157_v2  ;;  %v1176_v61 = vsel %vm1170_vm2, %v1163_v58, 920167782  ;;  %v1179_v3 = vsel %vm1167_vm9, %v1157_v2, %v1160_v56  ;;  %v965_v4 = vadd.s32 %v2881_v21, %v2887_v19 }
  0x8c   :  { %v2299_v7 = vadd.s32 4294967294, %v977_v60  ;;  %v1177_v10 = vsel %vm1169_vm0, %v1160_v56, %v1176_v61  ;;  %v1180_v47 = vsel %vm1170_vm2, %v1166_v20, 1326507024  ;;  %v1174_v13 = vsel %vm1168_vm4, %v1171_v36, %v1173_v1 }
  0x8d   :  { %v1178_v11 = vsel %vm1168_vm4, %v1175_v25, %v1177_v10  ;;  %v1181_v52 = vsel %vm1169_vm0, %v1163_v58, %v1180_v47  ;;  %v2964_v12 = vmul.f32 64.0, %v2479_v0  ;;  %v995_v19 = vsub.s32 4, %v2923_v55 }
  0x8e   :  { %vm2300_vm5 = vcmp.lt.s32.totalorder %v2299_v7, 0  ;;  %v1182_v9 = vsel %vm1168_vm4, %v1179_v3, %v1181_v52  ;;  %v2967_v15 = vmul.u32.u64.low %v1183_v63, %v1178_v11  ;;  %v2968_v39 = vmul.u32.u64.high %v1183_v63, %v1178_v11, %v2967_v15 }
  0x8f   :  { %v980_v21 = vsel %vm2300_vm5, 0, %v2299_v7  ;;  %v2973_v40 = vmul.u32.u64.low %v1183_v63, %v1182_v9  ;;  %v2974_v5 = vmul.u32.u64.high %v1183_v63, %v1182_v9, %v2973_v40  ;;  %vm2978_vm7 = vcmp.le.f32.partialorder %v909_v45, 0.7853982 }
  0x90   :  { %v981_v17 = vsub.s32 32, %v980_v21  ;;  %v982_v33 = vshll.u32 %v2938_v48, %v980_v21  ;;  %v985_v18 = vsub.s32 4294967266, %v980_v21  ;;  %vm894_vm8 = vcmp.lt.s32.totalorder %v2950_v37, 2 }
  0x91   :  { %vm895_vm11 = vcmp.eq.s32.totalorder %v2950_v37, 0  ;;  %v1190_v22 = vmul.u32 %v1183_v63, %v1174_v13  ;;  %v1359_v31 = vand.u32 2139095040, %v2964_v12  ;;  %vm898_vm12 = vcmp.eq.s32.totalorder %v2950_v37, 2 }
  0x92   :  { %v983_v27 = vshrl.u32 %v965_v4, %v981_v17  ;;  %v986_v8 = vadd.s32 127, %v985_v18  ;;  %v1193_v45 = vadd.s32 1, %v2968_v39  ;;  %vm783_vm13 = vcmp.lt.s32.totalorder %v2948_v59, 2 }
  0x93   :  { %v996_v50 = vsel %vm911_vm3, %v995_v19, %v2923_v55  ;;  %vm1192_vm14 = vc.u32 %v2974_v5, %v2967_v15  ;;  %v1360_v41 = vshrl.u32 %v1359_v31, 23  ;;  %vm787_vm15 = vcmp.eq.s32.totalorder %v2948_v59, 2 }
  0x94   :  { %v2408_v62 = vpop.eup %2407  ;;  %v984_v57 = vor.u32 %v983_v27, %v982_v33  ;;  %v987_v48 = vshll.u32 %v986_v8, 23  ;;  %v1194_v44 = vsel %vm1192_vm14, %v1193_v45, %v2968_v39  ;;  %vm784_vm1 = vcmp.eq.s32.totalorder %v2948_v59, 0 }
  0x95   :  { %v2410_v49 = vpop.eup %2409  ;;  %v788_v51 = vxor.u32 2147483648, %v2408_v62  ;;  %v1195_v29 = vadd.s32 %v1194_v44, %v1190_v22  ;;  %v2313_v53 = vadd.s32 4294967169, %v1360_v41  ;;  %v998_v54 = vsel %vm2978_vm7, 0, %v996_v50 }
  0x96   :  { %v785_v38 = vxor.u32 2147483648, %v2410_v49  ;;  %v988_v6 = vor.u32 4788187, %v987_v48  ;;  %v991_v55 = vcvt.s32.f32 %v984_v57  ;;  %v1356_v36 = vand.u32 2147483647, %v2964_v12 }
  0x97   :  { %v789_v2 = vsel %vm787_vm15, %v788_v51, %v2410_v49  ;;  %v900_v56 = vsel %vm898_vm12, %v788_v51, %v2410_v49  ;;  %v1196_v58 = vadd.s32 536870912, %v1195_v29  ;;  %v1366_v20 = vadd.s32 1, %v2313_v53 }
  0x98   :  { %v786_v46 = vsel %vm784_vm1, %v2408_v62, %v785_v38  ;;  %v897_v24 = vsel %vm895_vm11, %v2408_v62, %v785_v38  ;;  %v989_v60 = vand.u32 2147483647, %v988_v6  ;;  %v1363_v37 = vand.u32 8388607, %v1356_v36 }
  0x99   :  { %v790_v63 = vsel %vm783_vm13, %v786_v46, %v789_v2  ;;  %v901_v1 = vsel %vm894_vm8, %v897_v24, %v900_v56  ;;  %v3008_v25 = vshrl.u32 %v1196_v58, 30  ;;  %vm1367_vm10 = vcmp.gt.s32.totalorder %v1366_v20, 0 }
  0x9a   :  { %v791_v61 = vsel %vm780_vm6, nan, %v790_v63  ;;  %v902_v3 = vsel %vm780_vm6, nan, %v901_v1  ;;  %v992_v4 = vmul.f32 %v991_v55, %v989_v60  ;;  %v1368_v7 = vsel %vm1367_vm10, %v1366_v20, 0 }
  0x9b   :  { %v794_v10 = vrot.slane %v791_v61, 3  ;;  %v793_v47 = vcombine.high %v791_v61, %v791_v61  ;;  %906 = vst [vmem:[#allocation2 + $0x30] sm:$0x7] %v902_v3  ;;  %v904_v13 = vcombine.high %v902_v3, %v902_v3  ;;  %v1198_v59 = vshll.u32 %v3008_v25, 30 }
  0x9c   :  { %v993_v11 = vxor.u32 2147483648, %v992_v4  ;;  %v1370_v52 = vand.u32 31, %v1368_v7  ;;  %v1002_v39 = vadd.s32 3, %v998_v54  ;;  %v3025_v33 = vand.u32 3, %v998_v54 }
  0x9d   :  { %798 = vst [vmem:[#allocation2 + $0x20] sm:$0xe0] %v794_v10  ;;  %v795_v9 = vrot.slane %v793_v47, 3  ;;  %907 = vst [vmem:[#allocation2 + $0x38] sm:$0x7] %v904_v13  ;;  %v3017_v21 = vsub.s32 %v1195_v29, %v1198_v59  ;;  %v1364_v18 = vor.u32 8388608, %v1363_v37  ;;  %v1191_v27 = vadd.s32 %v2967_v15, %v2974_v5 }
  0x9e   :  { %v994_v14 = vsel %vm911_vm3, %v993_v11, %v992_v4  ;;  %v1371_v19 = vsub.s32 32, %v1370_v52  ;;  %v3028_v22 = vmul.f32 128.0, %v2479_v0  ;;  %v3030_v31 = vand.u32 3, %v1002_v39 }
  0x9f   :  { %799 = vst [vmem:[#allocation2 + $0x28] sm:$0xe0] %v795_v9  ;;  %v997_v40 = vsel %vm2978_vm7, %v2663_v23, %v994_v14  ;;  %v1201_v17 = vsub.s32 0, %v3017_v21  ;;  %v1373_v16 = vshll.u32 %v2457_v26, %v1370_v52  ;;  %v1376_v50 = vshll.u32 %v2458_v28, %v1370_v52 }
  0xa0   :  { %2411 = vcosq.f32 %v997_v40  ;;  %v1374_v45 = vshrl.u32 %v2458_v28, %v1371_v19  ;;  %v1377_v41 = vshrl.u32 %v2459_v30, %v1371_v19  ;;  %v1369_v57 = vshrl.u32 %v1368_v7, 5 }
  0xa1   :  { %2413 = vsinq.f32 %v997_v40  ;;  %v2306_v8 = vmin.u32 %v1201_v17, %v3017_v21  ;;  %v1379_v48 = vshll.u32 %v2459_v30, %v1370_v52  ;;  %v1582_v44 = vand.u32 2147483647, %v3028_v22 }
  0xa2   :  { %v1221_v49 = vsub.s32 4, %v3008_v25  ;;  %v1380_v15 = vshrl.u32 %v2460_v32, %v1371_v19  ;;  %v3043_v5 = vshll.u32 %v1364_v18, 8  ;;  %v1585_v51 = vand.u32 2139095040, %v3028_v22 }
  0xa3   :  { %v1203_v62 = vclz %v2306_v8  ;;  %vm1008_vm9 = vcmp.eq.s32.totalorder %v3030_v31, 2  ;;  %vm1119_vm2 = vcmp.eq.s32.totalorder %v3025_v33, 2  ;;  %v1382_v53 = vshll.u32 %v2460_v32, %v1370_v52 }
  0xa4   :  { %v1383_v38 = vshrl.u32 %v2461_v34, %v1371_v19  ;;  %v1385_v6 = vshll.u32 %v2461_v34, %v1370_v52  ;;  %vm1005_vm0 = vcmp.eq.s32.totalorder %v3030_v31, 0  ;;  %vm1116_vm3 = vcmp.eq.s32.totalorder %v3025_v33, 0 }
  0xa5   :  { %v2307_v29 = vadd.s32 4294967294, %v1203_v62  ;;  %v1375_v55 = vor.u32 %v1374_v45, %v1373_v16  ;;  %v1378_v54 = vor.u32 %v1377_v41, %v1376_v50  ;;  %v1381_v2 = vor.u32 %v1380_v15, %v1379_v48 }
  0xa6   :  { %v1386_v56 = vshrl.u32 %v2462_v42, %v1371_v19  ;;  %vm1004_vm4 = vcmp.lt.s32.totalorder %v3030_v31, 2  ;;  %vm1115_vm5 = vcmp.lt.s32.totalorder %v3025_v33, 2  ;;  %v1384_v58 = vor.u32 %v1383_v38, %v1382_v53 }
  0xa7   :  { %vm2308_vm6 = vcmp.lt.s32.totalorder %v2307_v29, 0  ;;  %vm1388_vm7 = vcmp.lt.s32.totalorder %v1369_v57, 1  ;;  %vm1391_vm8 = vcmp.lt.s32.totalorder %v1369_v57, 4  ;;  %vm1001_vm11 = vweird.f32 %v2663_v23 }
  0xa8   :  { %v1206_v20 = vsel %vm2308_vm6, 0, %v2307_v29  ;;  %v1372_v46 = vshrl.u32 %v2457_v26, %v1371_v19  ;;  %v1387_v24 = vor.u32 %v1386_v56, %v1385_v6  ;;  %vm1390_vm12 = vcmp.lt.s32.totalorder %v1369_v57, 3 }
  0xa9   :  { %v1207_v60 = vsub.s32 32, %v1206_v20  ;;  %v1208_v63 = vshll.u32 %v3017_v21, %v1206_v20  ;;  %v1211_v1 = vsub.s32 4294967266, %v1206_v20  ;;  %v1393_v61 = vsel %vm1391_vm8, %v1381_v2, 2102212464 }
  0xaa   :  { %vm1389_vm13 = vcmp.lt.s32.totalorder %v1369_v57, 2  ;;  %v1396_v3 = vsel %vm1388_vm7, %v1375_v55, %v1378_v54  ;;  %v1397_v4 = vsel %vm1391_vm8, %v1384_v58, 920167782  ;;  %v1400_v7 = vsel %vm1388_vm7, %v1378_v54, %v1381_v2 }
  0xab   :  { %v1209_v10 = vshrl.u32 %v1191_v27, %v1207_v60  ;;  %v1212_v47 = vadd.s32 127, %v1211_v1  ;;  %v1398_v13 = vsel %vm1390_vm12, %v1381_v2, %v1397_v4  ;;  %v1401_v59 = vsel %vm1391_vm8, %v1387_v24, 1326507024 }
  0xac   :  { %vm1137_vm14 = vcmp.lt.s32.totalorder %v2816_v35, 0  ;;  %v1392_v11 = vsel %vm1388_vm7, %v1372_v46, %v1375_v55  ;;  %v1394_v37 = vsel %vm1390_vm12, %v1378_v54, %v1393_v61  ;;  %v1402_v52 = vsel %vm1390_vm12, %v1384_v58, %v1401_v59 }
  0xad   :  { %v1586_v9 = vshrl.u32 %v1585_v51, 23  ;;  %v2412_v39 = vpop.eup %2411  ;;  %v1210_v21 = vor.u32 %v1209_v10, %v1208_v63  ;;  %v1213_v14 = vshll.u32 %v1212_v47, 23  ;;  %v1399_v19 = vsel %vm1389_vm13, %v1396_v3, %v1398_v13 }
  0xae   :  { %v1403_v40 = vsel %vm1389_vm13, %v1400_v7, %v1402_v52  ;;  %v2414_v17 = vpop.eup %2413  ;;  %v1009_v18 = vxor.u32 2147483648, %v2412_v39  ;;  %v1395_v62 = vsel %vm1389_vm13, %v1392_v11, %v1394_v37  ;;  %vm3102_vm10 = vcmp.le.f32.partialorder %v1135_v43, 0.7853982 }
  0xaf   :  { %v3072_v27 = vmul.u32.u64.low %v3043_v5, %v1403_v40  ;;  %v3073_v8 = vmul.u32.u64.high %v3043_v5, %v1403_v40, %v3072_v27  ;;  %v2321_v16 = vadd.s32 4294967169, %v1586_v9  ;;  %v1006_v45 = vxor.u32 2147483648, %v2414_v17 }
  0xb0   :  { %v1214_v50 = vor.u32 4788187, %v1213_v14  ;;  %v1217_v41 = vcvt.s32.f32 %v1210_v21  ;;  %v1010_v48 = vsel %vm1008_vm9, %v1009_v18, %v2414_v17  ;;  %v1121_v15 = vsel %vm1119_vm2, %v1009_v18, %v2414_v17 }
  0xb1   :  { %v3081_v51 = vmul.u32.u64.low %v3043_v5, %v1399_v19  ;;  %v3082_v29 = vmul.u32.u64.high %v3043_v5, %v1399_v19, %v3081_v51  ;;  %v1007_v53 = vsel %vm1005_vm0, %v2412_v39, %v1006_v45  ;;  %v1118_v38 = vsel %vm1116_vm3, %v2412_v39, %v1006_v45 }
  0xb2   :  { %v1215_v6 = vand.u32 2147483647, %v1214_v50  ;;  %v1592_v57 = vadd.s32 1, %v2321_v16  ;;  %v1011_v55 = vsel %vm1004_vm4, %v1007_v53, %v1010_v48  ;;  %v1122_v54 = vsel %vm1115_vm5, %v1118_v38, %v1121_v15 }
  0xb3   :  { %v1411_v2 = vmul.u32 %v3043_v5, %v1395_v62  ;;  %vm1413_vm15 = vc.u32 %v3073_v8, %v3081_v51  ;;  %v1012_v56 = vsel %vm1001_vm11, nan, %v1011_v55  ;;  %v1123_v58 = vsel %vm1001_vm11, nan, %v1122_v54 }
  0xb4   :  { %v1218_v20 = vmul.f32 %v1217_v41, %v1215_v6  ;;  %vm1593_vm1 = vcmp.gt.s32.totalorder %v1592_v57, 0  ;;  %v1015_v46 = vrot.slane %v1012_v56, 5  ;;  %v1014_v24 = vcombine.high %v1012_v56, %v1012_v56 }
  0xb5   :  { %v1126_v31 = vrot.slane %v1123_v58, 2  ;;  %v1125_v60 = vcombine.high %v1123_v58, %v1123_v58  ;;  %v1414_v63 = vadd.s32 1, %v3082_v29  ;;  %v1594_v1 = vsel %vm1593_vm1, %v1592_v57, 0 }
  0xb6   :  { %v1219_v5 = vxor.u32 2147483648, %v1218_v20  ;;  %1019 = vst [vmem:[#allocation2 + $0x30] sm:$0x38] %v1015_v46  ;;  %v1016_v61 = vrot.slane %v1014_v24, 5  ;;  %v1589_v3 = vand.u32 8388607, %v1582_v44  ;;  %v1222_v43 = vsel %vm1137_vm14, %v1221_v49, %v3008_v25 }
  0xb7   :  { %1130 = vst [vmem:[#allocation2 + $0x40] ss:$-12 sps:$4 sm:$0xc1] %v1126_v31   ;;  %v1127_v23 = vrot.slane %v1125_v60, 2  ;;  %v1596_v4 = vand.u32 31, %v1594_v1  ;;  %v1415_v10 = vsel %vm1413_vm15, %v1414_v63, %v3082_v29  ;;  %v3120_v47 = vshrl.u32 %v1594_v1, 5 }
  0xb8   :  { %v1220_v7 = vsel %vm1137_vm14, %v1219_v5, %v1218_v20  ;;  %1020 = vst [vmem:[#allocation2 + $0x38] sm:$0x38] %v1016_v61  ;;  %v1416_v59 = vadd.s32 %v1415_v10, %v1411_v2  ;;  %v1224_v9 = vsel %vm3102_vm10, 0, %v1222_v43  ;;  %v1590_v27 = vor.u32 8388608, %v1589_v3 }
  0xb9   :  { %1131 = vst [vmem:[#allocation2 + $0x48] ss:$-12 sps:$4 sm:$0xc1] %v1127_v23   ;;  %v1223_v13 = vsel %vm3102_vm10, %v2816_v35, %v1220_v7  ;;  %v1597_v11 = vsub.s32 32, %v1596_v4  ;;  %v1599_v37 = vshll.u32 %v2457_v26, %v1596_v4  ;;  %v1602_v25 = vshll.u32 %v2458_v28, %v1596_v4 }
  0xba   :  { %2415 = vcosq.f32 %v1223_v13  ;;  %v1605_v49 = vshll.u32 %v2459_v30, %v1596_v4  ;;  %v1608_v52 = vshll.u32 %v2460_v32, %v1596_v4  ;;  %v1417_v39 = vadd.s32 536870912, %v1416_v59 }
  0xbb   :  { %2417 = vsinq.f32 %v1223_v13  ;;  %v1600_v21 = vshrl.u32 %v2458_v28, %v1597_v11  ;;  %v1603_v14 = vshrl.u32 %v2459_v30, %v1597_v11  ;;  %v1606_v19 = vshrl.u32 %v2460_v32, %v1597_v11 }
  0xbc   :  { %v1609_v40 = vshrl.u32 %v2461_v34, %v1597_v11  ;;  %v1611_v17 = vshll.u32 %v2461_v34, %v1596_v4  ;;  %v3136_v18 = vshrl.u32 %v1417_v39, 30  ;;  %v1612_v45 = vshrl.u32 %v2462_v42, %v1597_v11 }
  0xbd   :  { %v1601_v16 = vor.u32 %v1600_v21, %v1599_v37  ;;  %v1604_v50 = vor.u32 %v1603_v14, %v1602_v25  ;;  %v1607_v41 = vor.u32 %v1606_v19, %v1605_v49  ;;  %vm1614_vm9 = vcmp.lt.s32.totalorder %v3120_v47, 1 }
  0xbe   :  { %v1610_v62 = vor.u32 %v1609_v40, %v1608_v52  ;;  %v1228_v48 = vadd.s32 3, %v1224_v9  ;;  %v1419_v15 = vshll.u32 %v3136_v18, 30  ;;  %v1613_v29 = vor.u32 %v1612_v45, %v1611_v17 }
  0xbf   :  { %vm1616_vm2 = vcmp.lt.s32.totalorder %v3120_v47, 3  ;;  %v1340_v53 = vand.u32 3, %v1224_v9  ;;  %v1598_v38 = vshrl.u32 %v2457_v26, %v1597_v11  ;;  %vm1615_vm0 = vcmp.lt.s32.totalorder %v3120_v47, 2 }
  0xc0   :  { %vm1617_vm3 = vcmp.lt.s32.totalorder %v3120_v47, 4  ;;  %v3145_v6 = vsub.s32 %v1416_v59, %v1419_v15  ;;  %v1622_v55 = vsel %vm1614_vm9, %v1601_v16, %v1604_v50  ;;  %v3151_v58 = vshll.u32 %v1590_v27, 8 }
  0xc1   :  { %v1619_v57 = vsel %vm1617_vm3, %v1607_v41, 2102212464  ;;  %v1623_v54 = vsel %vm1617_vm3, %v1610_v62, 920167782  ;;  %v1627_v56 = vsel %vm1617_vm3, %v1613_v29, 1326507024  ;;  %v1626_v24 = vsel %vm1614_vm9, %v1604_v50, %v1607_v41 }
  0xc2   :  { %v1624_v2 = vsel %vm1616_vm2, %v1607_v41, %v1623_v54  ;;  %v1229_v20 = vand.u32 3, %v1228_v48  ;;  %v1422_v46 = vsub.s32 0, %v3145_v6  ;;  %v3157_v31 = vmul.f32 256.0, %v2479_v0 }
  0xc3   :  { %v1618_v60 = vsel %vm1614_vm9, %v1598_v38, %v1601_v16  ;;  %v1620_v33 = vsel %vm1616_vm2, %v1604_v50, %v1619_v57  ;;  %v1625_v5 = vsel %vm1615_vm0, %v1622_v55, %v1624_v2  ;;  %v1628_v63 = vsel %vm1616_vm2, %v1610_v62, %v1627_v56 }
  0xc4   :  { %vm1227_vm4 = vweird.f32 %v2816_v35  ;;  %vm1341_vm5 = vcmp.lt.s32.totalorder %v1340_v53, 2  ;;  %vm1342_vm6 = vcmp.eq.s32.totalorder %v1340_v53, 0  ;;  %v2314_v1 = vmin.u32 %v1422_v46, %v3145_v6 }
  0xc5   :  { %vm1345_vm7 = vcmp.eq.s32.totalorder %v1340_v53, 2  ;;  %v1629_v61 = vsel %vm1615_vm0, %v1626_v24, %v1628_v63  ;;  %v3172_v23 = vmul.u32.u64.low %v3151_v58, %v1625_v5  ;;  %v3173_v3 = vmul.u32.u64.high %v3151_v58, %v1625_v5, %v3172_v23 }
  0xc6   :  { %vm1231_vm8 = vcmp.eq.s32.totalorder %v1229_v20, 0  ;;  %vm1234_vm11 = vcmp.eq.s32.totalorder %v1229_v20, 2  ;;  %v1424_v7 = vclz %v2314_v1  ;;  %v1621_v43 = vsel %vm1615_vm0, %v1618_v60, %v1620_v33 }
  0xc7   :  { %v2416_v4 = vpop.eup %2415  ;;  %v3179_v59 = vmul.u32.u64.low %v3151_v58, %v1629_v61  ;;  %v3180_v11 = vmul.u32.u64.high %v3151_v58, %v1629_v61, %v3179_v59  ;;  %v1806_v37 = vand.u32 2139095040, %v3157_v31  ;;  %vm1230_vm12 = vcmp.lt.s32.totalorder %v1229_v20, 2 }
  0xc8   :  { %v2418_v10 = vpop.eup %2417  ;;  %v1235_v13 = vxor.u32 2147483648, %v2416_v4  ;;  %v1412_v49 = vadd.s32 %v3081_v51, %v3073_v8  ;;  %v2315_v52 = vadd.s32 4294967294, %v1424_v7  ;;  %v1442_v47 = vsub.s32 4, %v3136_v18 }
  0xc9   :  { %v1232_v25 = vxor.u32 2147483648, %v2418_v10  ;;  %v1637_v21 = vmul.u32 %v3151_v58, %v1621_v43  ;;  %v1807_v40 = vshrl.u32 %v1806_v37, 23  ;;  %v1640_v8 = vadd.s32 1, %v3173_v3 }
  0xca   :  { %v1236_v9 = vsel %vm1234_vm11, %v1235_v13, %v2418_v10  ;;  %v1347_v39 = vsel %vm1345_vm7, %v1235_v13, %v2418_v10  ;;  %vm2316_vm13 = vcmp.lt.s32.totalorder %v2315_v52, 0  ;;  %vm1358_vm14 = vcmp.lt.s32.totalorder %v2964_v12, 0 }
  0xcb   :  { %v1233_v14 = vsel %vm1231_vm8, %v2416_v4, %v1232_v25  ;;  %v1344_v19 = vsel %vm1342_vm6, %v2416_v4, %v1232_v25  ;;  %v1427_v16 = vsel %vm2316_vm13, 0, %v2315_v52  ;;  %vm1639_vm15 = vc.u32 %v3180_v11, %v3172_v23 }
  0xcc   :  { %v1237_v17 = vsel %vm1230_vm12, %v1233_v14, %v1236_v9  ;;  %v1348_v27 = vsel %vm1341_vm5, %v1344_v19, %v1347_v39  ;;  %v1428_v50 = vsub.s32 32, %v1427_v16  ;;  %v1429_v41 = vshll.u32 %v3145_v6, %v1427_v16 }
  0xcd   :  { %v1238_v51 = vsel %vm1227_vm4, nan, %v1237_v17  ;;  %v1349_v45 = vsel %vm1227_vm4, nan, %v1348_v27  ;;  %v1432_v29 = vsub.s32 4294967266, %v1427_v16  ;;  %v2329_v38 = vadd.s32 4294967169, %v1807_v40 }
  0xce   :  { %v1241_v62 = vrot.slane %v1238_v51, 7  ;;  %v1240_v48 = vcombine.high %v1238_v51, %v1238_v51  ;;  %v1351_v15 = vcombine.low %v1349_v45, %v1349_v45  ;;  %1354 = vst [vmem:[#allocation2 + $0x48] sm:$0x70] %v1349_v45  ;;  %v1430_v53 = vshrl.u32 %v1412_v49, %v1428_v50 }
  0xcf   :  { %v1433_v35 = vadd.s32 127, %v1432_v29  ;;  %v1641_v55 = vsel %vm1639_vm15, %v1640_v8, %v3173_v3  ;;  %v1803_v6 = vand.u32 2147483647, %v3157_v31  ;;  %v1443_v2 = vsel %vm1358_vm14, %v1442_v47, %v3136_v18 }
  0xd0   :  { %1245 = vst [vmem:[#allocation2 + $0x40] sm:$0xe] %v1241_v62  ;;  %v1242_v57 = vrot.slane %v1240_v48, 7  ;;  %1353 = vst [vmem:[#allocation2 + $0x40] sm:$0x70] %v1351_v15  ;;  %v1431_v54 = vor.u32 %v1430_v53, %v1429_v41  ;;  %v1642_v56 = vadd.s32 %v1641_v55, %v1637_v21  ;;  %v1813_v58 = vadd.s32 1, %v2329_v38 }
  0xd1   :  { %v1434_v20 = vshll.u32 %v1433_v35, 23  ;;  %vm3207_vm1 = vcmp.le.f32.partialorder %v1356_v36, 0.7853982  ;;  %v1810_v18 = vand.u32 8388607, %v1803_v6  ;;  %v3218_v3 = vmul.f32 512.0, %v2479_v0 }
  0xd2   :  { %1246 = vst [vmem:[#allocation2 + $0x48] sm:$0xe] %v1242_v57  ;;  %v1643_v24 = vadd.s32 536870912, %v1642_v56  ;;  %vm1814_vm10 = vcmp.gt.s32.totalorder %v1813_v58, 0  ;;  %v1438_v33 = vcvt.s32.f32 %v1431_v54  ;;  %v1445_v5 = vsel %vm3207_vm1, 0, %v1443_v2 }
  0xd3   :  { %v1435_v60 = vor.u32 4788187, %v1434_v20  ;;  %v1815_v63 = vsel %vm1814_vm10, %v1813_v58, 0  ;;  %v1449_v4 = vadd.s32 3, %v1445_v5  ;;  %v3221_v13 = vand.u32 3, %v1445_v5 }
  0xd4   :  { %v3213_v1 = vshrl.u32 %v1643_v24, 30  ;;  %v1817_v61 = vand.u32 31, %v1815_v63  ;;  %v1811_v37 = vor.u32 8388608, %v1810_v18  ;;  %v2032_v49 = vand.u32 2139095040, %v3218_v3 }
  0xd5   :  { %v1436_v36 = vand.u32 2147483647, %v1435_v60  ;;  %v3230_v47 = vand.u32 3, %v1449_v4  ;;  %v1816_v14 = vshrl.u32 %v1815_v63, 5  ;;  %v1638_v51 = vadd.s32 %v3172_v23, %v3180_v11 }
  0xd6   :  { %v1645_v7 = vshll.u32 %v3213_v1, 30  ;;  %v1818_v43 = vsub.s32 32, %v1817_v61  ;;  %v1820_v25 = vshll.u32 %v2457_v26, %v1817_v61  ;;  %v1823_v0 = vshll.u32 %v2458_v28, %v1817_v61 }
  0xd7   :  { %v1439_v10 = vmul.f32 %v1438_v33, %v1436_v36  ;;  %v1829_v19 = vshll.u32 %v2460_v32, %v1817_v61  ;;  %v1826_v17 = vshll.u32 %v2459_v30, %v1817_v61  ;;  %v2033_v50 = vshrl.u32 %v2032_v49, 23 }
  0xd8   :  { %v3223_v59 = vsub.s32 %v1642_v56, %v1645_v7  ;;  %v1821_v9 = vshrl.u32 %v2458_v28, %v1818_v43  ;;  %v1824_v39 = vshrl.u32 %v2459_v30, %v1818_v43  ;;  %v1827_v27 = vshrl.u32 %v2460_v32, %v1818_v43 }
  0xd9   :  { %v1440_v52 = vxor.u32 2147483648, %v1439_v10  ;;  %v1830_v16 = vshrl.u32 %v2461_v34, %v1818_v43  ;;  %v3245_v48 = vshll.u32 %v1811_v37, 8  ;;  %v1819_v29 = vshrl.u32 %v2457_v26, %v1818_v43 }
  0xda   :  { %v1648_v21 = vsub.s32 0, %v3223_v59  ;;  %v1822_v41 = vor.u32 %v1821_v9, %v1820_v25  ;;  %v1825_v62 = vor.u32 %v1824_v39, %v1823_v0  ;;  %v1828_v38 = vor.u32 %v1827_v27, %v1826_v17 }
  0xdb   :  { %v1441_v40 = vsel %vm1358_vm14, %v1440_v52, %v1439_v10  ;;  %v1831_v53 = vor.u32 %v1830_v16, %v1829_v19  ;;  %v1832_v57 = vshll.u32 %v2461_v34, %v1817_v61  ;;  %v1833_v35 = vshrl.u32 %v2462_v42, %v1818_v43 }
  0xdc   :  { %v1444_v8 = vsel %vm3207_vm1, %v2964_v12, %v1441_v40  ;;  %v2322_v45 = vmin.u32 %v1648_v21, %v3223_v59  ;;  %vm1835_vm9 = vcmp.lt.s32.totalorder %v1816_v14, 1  ;;  %vm1837_vm2 = vcmp.lt.s32.totalorder %v1816_v14, 3 }
  0xdd   :  { %2419 = vcosq.f32 %v1444_v8  ;;  %vm1838_vm0 = vcmp.lt.s32.totalorder %v1816_v14, 4  ;;  %v2337_v11 = vadd.s32 4294967169, %v2033_v50  ;;  %v1834_v55 = vor.u32 %v1833_v35, %v1832_v57 }
  0xde   :  { %2421 = vsinq.f32 %v1444_v8  ;;  %v1650_v15 = vclz %v2322_v45  ;;  %vm1836_vm3 = vcmp.lt.s32.totalorder %v1816_v14, 2  ;;  %v1840_v54 = vsel %vm1838_vm0, %v1828_v38, 2102212464 }
  0xdf   :  { %v1843_v2 = vsel %vm1835_vm9, %v1822_v41, %v1825_v62  ;;  %v1839_v56 = vsel %vm1835_vm9, %v1819_v29, %v1822_v41  ;;  %v1841_v58 = vsel %vm1837_vm2, %v1825_v62, %v1840_v54  ;;  %v1844_v20 = vsel %vm1838_vm0, %v1831_v53, 920167782 }
  0xe0   :  { %v2323_v23 = vadd.s32 4294967294, %v1650_v15  ;;  %v1845_v24 = vsel %vm1837_vm2, %v1828_v38, %v1844_v20  ;;  %v1847_v60 = vsel %vm1835_vm9, %v1825_v62, %v1828_v38  ;;  %v1848_v33 = vsel %vm1838_vm0, %v1834_v55, 1326507024 }
  0xe1   :  { %vm1584_vm5 = vcmp.lt.s32.totalorder %v3028_v22, 0  ;;  %v1846_v61 = vsel %vm1836_vm3, %v1843_v2, %v1845_v24  ;;  %vm1448_vm6 = vweird.f32 %v2964_v12  ;;  %vm1564_vm7 = vcmp.lt.s32.totalorder %v3221_v13, 2 }
  0xe2   :  { %vm2324_vm4 = vcmp.lt.s32.totalorder %v2323_v23, 0  ;;  %v1849_v36 = vsel %vm1837_vm2, %v1831_v53, %v1848_v33  ;;  %v3259_v4 = vmul.u32.u64.low %v3245_v48, %v1846_v61  ;;  %v3260_v7 = vmul.u32.u64.high %v3245_v48, %v1846_v61, %v3259_v4 }
  0xe3   :  { %v1653_v46 = vsel %vm2324_vm4, 0, %v2323_v23  ;;  %v1842_v37 = vsel %vm1836_vm3, %v1839_v56, %v1841_v58  ;;  %vm1565_vm8 = vcmp.eq.s32.totalorder %v3221_v13, 0  ;;  %vm3268_vm11 = vcmp.le.f32.partialorder %v1582_v44, 0.7853982 }
  0xe4   :  { %v1654_v5 = vsub.s32 32, %v1653_v46  ;;  %v1655_v63 = vshll.u32 %v3223_v59, %v1653_v46  ;;  %v1658_v18 = vsub.s32 4294967266, %v1653_v46  ;;  %v1850_v59 = vsel %vm1836_vm3, %v1847_v60, %v1849_v36 }
  0xe5   :  { %v3273_v49 = vmul.u32.u64.low %v3245_v48, %v1850_v59  ;;  %v3274_v52 = vmul.u32.u64.high %v3245_v48, %v1850_v59, %v3273_v49  ;;  %v2039_v9 = vadd.s32 1, %v2337_v11  ;;  %vm1455_vm12 = vcmp.eq.s32.totalorder %v3230_v47, 2 }
  0xe6   :  { %v1656_v43 = vshrl.u32 %v1638_v51, %v1654_v5  ;;  %v1659_v10 = vadd.s32 127, %v1658_v18  ;;  %vm1568_vm13 = vcmp.eq.s32.totalorder %v3221_v13, 2  ;;  %v1668_v21 = vsub.s32 4, %v3213_v1 }
  0xe7   :  { %v1858_v14 = vmul.u32 %v3245_v48, %v1842_v37  ;;  %v1861_v44 = vadd.s32 1, %v3260_v7  ;;  %vm2040_vm14 = vcmp.gt.s32.totalorder %v2039_v9, 0  ;;  %v2029_v27 = vand.u32 2147483647, %v3218_v3 }
  0xe8   :  { %v1657_v0 = vor.u32 %v1656_v43, %v1655_v63  ;;  %v1660_v39 = vshll.u32 %v1659_v10, 23  ;;  %v2041_v16 = vsel %vm2040_vm14, %v2039_v9, 0  ;;  %vm1451_vm15 = vcmp.lt.s32.totalorder %v3230_v47, 2 }
  0xe9   :  { %vm1452_vm1 = vcmp.eq.s32.totalorder %v3230_v47, 0  ;;  %vm1860_vm10 = vc.u32 %v3274_v52, %v3259_v4  ;;  %v2043_v62 = vand.u32 31, %v2041_v16  ;;  %v1669_v29 = vsel %vm1584_vm5, %v1668_v21, %v3213_v1 }
  0xea   :  { %v2420_v19 = vpop.eup %2419  ;;  %v1661_v40 = vor.u32 4788187, %v1660_v39  ;;  %v1664_v17 = vcvt.s32.f32 %v1657_v0  ;;  %v1862_v41 = vsel %vm1860_vm10, %v1861_v44, %v3260_v7  ;;  %v2036_v23 = vand.u32 8388607, %v2029_v27 }
  0xeb   :  { %v2422_v8 = vpop.eup %2421  ;;  %v1456_v51 = vxor.u32 2147483648, %v2420_v19  ;;  %v1863_v53 = vadd.s32 %v1862_v41, %v1858_v14  ;;  %v2044_v2 = vsub.s32 32, %v2043_v62  ;;  %v1671_v20 = vsel %vm3268_vm11, 0, %v1669_v29 }
  0xec   :  { %v1453_v45 = vxor.u32 2147483648, %v2422_v8  ;;  %v1662_v50 = vand.u32 2147483647, %v1661_v40  ;;  %v3312_v5 = vshrl.u32 %v2041_v16, 5  ;;  %v2046_v63 = vshll.u32 %v2457_v26, %v2043_v62 }
  0xed   :  { %v1457_v48 = vsel %vm1455_vm12, %v1456_v51, %v2422_v8  ;;  %v1570_v15 = vsel %vm1568_vm13, %v1456_v51, %v2422_v8  ;;  %v1864_v54 = vadd.s32 536870912, %v1863_v53  ;;  %v2047_v36 = vshrl.u32 %v2458_v28, %v2044_v2 }
  0xee   :  { %v1454_v38 = vsel %vm1452_vm1, %v2420_v19, %v1453_v45  ;;  %v1567_v57 = vsel %vm1565_vm8, %v2420_v19, %v1453_v45  ;;  %v1665_v35 = vmul.f32 %v1664_v17, %v1662_v50  ;;  %v2049_v43 = vshll.u32 %v2458_v28, %v2043_v62 }
  0xef   :  { %v1458_v11 = vsel %vm1451_vm15, %v1454_v38, %v1457_v48  ;;  %v1571_v55 = vsel %vm1564_vm7, %v1567_v57, %v1570_v15  ;;  %v3310_v33 = vshrl.u32 %v1864_v54, 30  ;;  %v2050_v10 = vshrl.u32 %v2459_v30, %v2044_v2 }
  0xf0   :  { %v1459_v1 = vsel %vm1448_vm6, nan, %v1458_v11  ;;  %v1572_v56 = vsel %vm1448_vm6, nan, %v1571_v55  ;;  %v1666_v58 = vxor.u32 2147483648, %v1665_v35  ;;  %v2052_v37 = vshll.u32 %v2459_v30, %v2043_v62 }
  0xf1   :  { %v1462_v46 = vrot.slane %v1459_v1, 1  ;;  %v1461_v24 = vcombine.high %v1459_v1, %v1459_v1  ;;  %v1575_v60 = vrot.slane %v1572_v56, 6  ;;  %v1574_v47 = vcombine.high %v1572_v56, %v1572_v56 }
  0xf2   :  { %v1667_v13 = vsel %vm1584_vm5, %v1666_v58, %v1665_v35  ;;  %v1866_v7 = vshll.u32 %v3310_v33, 30  ;;  %v2053_v59 = vshrl.u32 %v2460_v32, %v2044_v2  ;;  %v1675_v49 = vadd.s32 3, %v1671_v20 }
  0xf3   :  { %1466 = vst [vmem:[#allocation2 + $0x50] ss:$-12 sps:$4 sm:$0x83] %v1462_v46   ;;  %v1463_v12 = vrot.slane %v1461_v24, 1  ;;  %1579 = vst [vmem:[#allocation2 + $0x50] sm:$0x1c] %v1575_v60  ;;  %v1670_v61 = vsel %vm3268_vm11, %v3028_v22, %v1667_v13  ;;  %v2055_v25 = vshll.u32 %v2460_v32, %v2043_v62  ;;  %v2056_v0 = vshrl.u32 %v2461_v34, %v2044_v2 }
  0xf4   :  { %v1576_v18 = vrot.slane %v1574_v47, 6  ;;  %2423 = vcosq.f32 %v1670_v61  ;;  %v3324_v9 = vsub.s32 %v1863_v53, %v1866_v7  ;;  %v3328_v39 = vand.u32 3, %v1671_v20 }
  0xf5   :  { %1467 = vst [vmem:[#allocation2 + $0x58] ss:$-12 sps:$4 sm:$0x83] %v1463_v12   ;;  %2425 = vsinq.f32 %v1670_v61  ;;  %v2037_v21 = vor.u32 8388608, %v2036_v23  ;;  %v2058_v28 = vshll.u32 %v2461_v34, %v2043_v62  ;;  %v2059_v14 = vshrl.u32 %v2462_v42, %v2044_v2 }
  0xf6   :  { %1580 = vst [vmem:[#allocation2 + $0x58] sm:$0x1c] %v1576_v18  ;;  %v1869_v44 = vsub.s32 0, %v3324_v9  ;;  %v2048_v19 = vor.u32 %v2047_v36, %v2046_v63  ;;  %v2051_v30 = vor.u32 %v2050_v10, %v2049_v43  ;;  %vm2061_vm9 = vcmp.lt.s32.totalorder %v3312_v5, 1 }
  0xf7   :  { %v2045_v40 = vshrl.u32 %v2457_v26, %v2044_v2  ;;  %v2054_v17 = vor.u32 %v2053_v59, %v2052_v37  ;;  %v2057_v16 = vor.u32 %v2056_v0, %v2055_v25  ;;  %v2060_v32 = vor.u32 %v2059_v14, %v2058_v28 }
  0xf8   :  { %v1676_v8 = vand.u32 3, %v1675_v49  ;;  %v2330_v51 = vmin.u32 %v1869_v44, %v3324_v9  ;;  %vm2064_vm2 = vcmp.lt.s32.totalorder %v3312_v5, 4  ;;  %vm1789_vm0 = vcmp.eq.s32.totalorder %v3328_v39, 0 }
  0xf9   :  { %vm1792_vm3 = vcmp.eq.s32.totalorder %v3328_v39, 2  ;;  %vm2063_vm4 = vcmp.lt.s32.totalorder %v3312_v5, 3  ;;  %v2066_v34 = vsel %vm2064_vm2, %v2054_v17, 2102212464  ;;  %vm2062_vm5 = vcmp.lt.s32.totalorder %v3312_v5, 2 }
  0xfa   :  { %v1871_v42 = vclz %v2330_v51  ;;  %v2069_v26 = vsel %vm2061_vm9, %v2048_v19, %v2051_v30  ;;  %v2077_v45 = vshll.u32 %v2037_v21, 8  ;;  %v2065_v50 = vsel %vm2061_vm9, %v2045_v40, %v2048_v19 }
  0xfb   :  { %v2070_v41 = vsel %vm2064_vm2, %v2057_v16, 920167782  ;;  %v2073_v62 = vsel %vm2061_vm9, %v2051_v30, %v2054_v17  ;;  %v2074_v48 = vsel %vm2064_vm2, %v2060_v32, 1326507024  ;;  %v2067_v29 = vsel %vm2063_vm4, %v2051_v30, %v2066_v34 }
  0xfc   :  { %v2331_v15 = vadd.s32 4294967294, %v1871_v42  ;;  %v2071_v53 = vsel %vm2063_vm4, %v2054_v17, %v2070_v41  ;;  %v2075_v38 = vsel %vm2063_vm4, %v2057_v16, %v2074_v48  ;;  %vm1678_vm6 = vcmp.eq.s32.totalorder %v1676_v8, 0 }
  0xfd   :  { %vm1681_vm7 = vcmp.eq.s32.totalorder %v1676_v8, 2  ;;  %v2072_v57 = vsel %vm2062_vm5, %v2069_v26, %v2071_v53  ;;  %v2076_v35 = vsel %vm2062_vm5, %v2073_v62, %v2075_v38  ;;  %v1859_v23 = vadd.s32 %v3259_v4, %v3274_v52 }
  0xfe   :  { %vm2332_vm8 = vcmp.lt.s32.totalorder %v2331_v15, 0  ;;  %v3353_v11 = vmul.u32.u64.low %v2077_v45, %v2076_v35  ;;  %v3354_v55 = vmul.u32.u64.high %v2077_v45, %v2076_v35, %v3353_v11  ;;  %v2068_v1 = vsel %vm2062_vm5, %v2065_v50, %v2067_v29 }
  0xff   :  { %v1874_v2 = vsel %vm2332_vm8, 0, %v2331_v15  ;;  %v3358_v56 = vmul.u32.u64.low %v2077_v45, %v2072_v57  ;;  %v3359_v58 = vmul.u32.u64.high %v2077_v45, %v2072_v57, %v3358_v56  ;;  %vm1674_vm11 = vweird.f32 %v3028_v22 }
 0x100   :  { %v1875_v24 = vsub.s32 32, %v1874_v2  ;;  %v1876_v60 = vshll.u32 %v3324_v9, %v1874_v2  ;;  %v1879_v47 = vsub.s32 4294967266, %v1874_v2  ;;  %vm1677_vm12 = vcmp.lt.s32.totalorder %v1676_v8, 2 }
 0x101   :  { %v2424_v54 = vpop.eup %2423  ;;  %vm1788_vm13 = vcmp.lt.s32.totalorder %v3328_v39, 2  ;;  %v2084_v61 = vmul.u32 %v2077_v45, %v2068_v1  ;;  %vm2086_vm14 = vc.u32 %v3354_v55, %v3358_v56  ;;  %v2087_v49 = vadd.s32 1, %v3359_v58 }
 0x102   :  { %v2426_v20 = vpop.eup %2425  ;;  %v1682_v46 = vxor.u32 2147483648, %v2424_v54  ;;  %v1877_v5 = vshrl.u32 %v1859_v23, %v1875_v24  ;;  %v1880_v63 = vadd.s32 127, %v1879_v47  ;;  %vm1805_vm15 = vcmp.lt.s32.totalorder %v3157_v31, 0 }
 0x103   :  { %v1679_v4 = vxor.u32 2147483648, %v2426_v20  ;;  %v2088_v28 = vsel %vm2086_vm14, %v2087_v49, %v3359_v58  ;;  %v1889_v22 = vsub.s32 4, %v3310_v33  ;;  %vm1804_vm1 = vcmp.le.f32.partialorder %v1803_v6, 0.7853982 }
 0x104   :  { %v1683_v52 = vsel %vm1681_vm7, %v1682_v46, %v2426_v20  ;;  %v1794_v13 = vsel %vm1792_vm3, %v1682_v46, %v2426_v20  ;;  %v1878_v43 = vor.u32 %v1877_v5, %v1876_v60  ;;  %v1881_v10 = vshll.u32 %v1880_v63, 23 }
 0x105   :  { %v1680_v12 = vsel %vm1678_vm6, %v2424_v54, %v1679_v4  ;;  %v1791_v18 = vsel %vm1789_vm0, %v2424_v54, %v1679_v4  ;;  %v2089_v19 = vadd.s32 %v2088_v28, %v2084_v61  ;;  %v1890_v51 = vsel %vm1805_vm15, %v1889_v22, %v3310_v33 }
 0x106   :  { %v1684_v36 = vsel %vm1677_vm12, %v1680_v12, %v1683_v52  ;;  %v1795_v7 = vsel %vm1788_vm13, %v1791_v18, %v1794_v13  ;;  %v1882_v39 = vor.u32 4788187, %v1881_v10  ;;  %v1885_v21 = vcvt.s32.f32 %v1878_v43 }
 0x107   :  { %v1685_v37 = vsel %vm1674_vm11, nan, %v1684_v36  ;;  %v1796_v59 = vsel %vm1674_vm11, nan, %v1795_v7  ;;  %v2090_v40 = vadd.s32 536870912, %v2089_v19  ;;  %v1892_v26 = vsel %vm1804_vm1, 0, %v1890_v51 }
 0x108   :  { %v1688_v9 = vrot.slane %v1685_v37, 3  ;;  %v1687_v25 = vcombine.high %v1685_v37, %v1685_v37  ;;  %1800 = vst [vmem:[#allocation2 + $0x60] sm:$0x7] %v1796_v59  ;;  %v1798_v0 = vcombine.high %v1796_v59, %v1796_v59  ;;  %v1883_v44 = vand.u32 2147483647, %v1882_v39 }
 0x109   :  { %v3381_v16 = vshrl.u32 %v2090_v40, 30  ;;  %v1896_v41 = vadd.s32 3, %v1892_v26  ;;  %v2008_v15 = vand.u32 3, %v1892_v26  ;;  %v2085_v29 = vadd.s32 %v3358_v56, %v3354_v55 }
 0x10a   :  { %1692 = vst [vmem:[#allocation2 + $0x50] sm:$0xe0] %v1688_v9  ;;  %v1689_v14 = vrot.slane %v1687_v25, 3  ;;  %1801 = vst [vmem:[#allocation2 + $0x68] sm:$0x7] %v1798_v0  ;;  %v1886_v30 = vmul.f32 %v1885_v21, %v1883_v44  ;;  %vm1895_vm4 = vweird.f32 %v3157_v31  ;;  %vm2031_vm7 = vcmp.lt.s32.totalorder %v3218_v3, 0 }
 0x10b   :  { %v2092_v8 = vshll.u32 %v3381_v16, 30  ;;  %v1897_v6 = vand.u32 3, %v1896_v41  ;;  %vm2010_vm2 = vcmp.eq.s32.totalorder %v2008_v15, 0  ;;  %vm2013_vm0 = vcmp.eq.s32.totalorder %v2008_v15, 2 }
 0x10c   :  { %1693 = vst [vmem:[#allocation2 + $0x58] sm:$0xe0] %v1689_v14  ;;  %v1887_v17 = vxor.u32 2147483648, %v1886_v30  ;;  %vm2009_vm6 = vcmp.lt.s32.totalorder %v2008_v15, 2  ;;  %v2115_v10 = vsub.s32 4, %v3381_v16 }
 0x10d   :  { %v2093_v42 = vsub.s32 %v2089_v19, %v2092_v8  ;;  %vm1902_vm9 = vcmp.eq.s32.totalorder %v1897_v6, 2  ;;  %vm1899_vm3 = vcmp.eq.s32.totalorder %v1897_v6, 0  ;;  %vm1898_vm5 = vcmp.lt.s32.totalorder %v1897_v6, 2 }
 0x10e   :  { %v1888_v32 = vsel %vm1805_vm15, %v1887_v17, %v1886_v30  ;;  %vm2030_vm8 = vcmp.le.f32.partialorder %v2029_v27, 0.7853982  ;;  %v2116_v49 = vsel %vm2031_vm7, %v2115_v10, %v3381_v16 }
 0x10f   :  { %v1891_v34 = vsel %vm1804_vm1, %v3157_v31, %v1888_v32  ;;  %v2095_v45 = vsub.s32 0, %v2093_v42  ;;  %v2118_v25 = vsel %vm2030_vm8, 0, %v2116_v49 }
 0x110   :  { %2427 = vcosq.f32 %v1891_v34  ;;  %v2122_v0 = vadd.s32 3, %v2118_v25  ;;  %v2234_v21 = vand.u32 3, %v2118_v25 }
 0x111   :  { %2429 = vsinq.f32 %v1891_v34  ;;  %v2338_v50 = vmin.u32 %v2095_v45, %v2093_v42 }
 0x112   :  { %v2123_v39 = vand.u32 3, %v2122_v0  ;;  %vm2239_vm12 = vcmp.eq.s32.totalorder %v2234_v21, 2  ;;  %vm2236_vm14 = vcmp.eq.s32.totalorder %v2234_v21, 0  ;;  %vm2235_vm1 = vcmp.lt.s32.totalorder %v2234_v21, 2 }
 0x113   :  { %v2097_v62 = vclz %v2338_v50 }
 0x114   :  { %vm2128_vm11 = vcmp.eq.s32.totalorder %v2123_v39, 2  ;;  %vm2125_vm13 = vcmp.eq.s32.totalorder %v2123_v39, 0  ;;  %vm2124_vm15 = vcmp.lt.s32.totalorder %v2123_v39, 2 }
 0x115   :  { %v2339_v48 = vadd.s32 4294967294, %v2097_v62 }
 0x117   :  { %vm2340_vm10 = vcmp.lt.s32.totalorder %v2339_v48, 0 }
 0x118   :  { %v2100_v53 = vsel %vm2340_vm10, 0, %v2339_v48  ;;  %vm2121_vm10 = vweird.f32 %v3218_v3 }
 0x119   :  { %v2101_v38 = vsub.s32 32, %v2100_v53  ;;  %v2102_v57 = vshll.u32 %v2093_v42, %v2100_v53  ;;  %v2105_v33 = vsub.s32 4294967266, %v2100_v53 }
 0x11b   :  { %v2103_v54 = vshrl.u32 %v2085_v29, %v2101_v38  ;;  %v2106_v2 = vadd.s32 127, %v2105_v33 }
 0x11d   :  { %v2428_v35 = vpop.eup %2427  ;;  %v2104_v58 = vor.u32 %v2103_v54, %v2102_v57  ;;  %v2107_v20 = vshll.u32 %v2106_v2, 23 }
 0x11e   :  { %v2430_v23 = vpop.eup %2429  ;;  %v1903_v11 = vxor.u32 2147483648, %v2428_v35 }
 0x11f   :  { %v1900_v1 = vxor.u32 2147483648, %v2430_v23  ;;  %v2108_v4 = vor.u32 4788187, %v2107_v20  ;;  %v2111_v5 = vcvt.s32.f32 %v2104_v58 }
 0x120   :  { %v1904_v55 = vsel %vm1902_vm9, %v1903_v11, %v2430_v23  ;;  %v2015_v56 = vsel %vm2013_vm0, %v1903_v11, %v2430_v23 }
 0x121   :  { %v1901_v46 = vsel %vm1899_vm3, %v2428_v35, %v1900_v1  ;;  %v2012_v24 = vsel %vm2010_vm2, %v2428_v35, %v1900_v1  ;;  %v2109_v61 = vand.u32 2147483647, %v2108_v4 }
 0x122   :  { %v1905_v60 = vsel %vm1898_vm5, %v1901_v46, %v1904_v55  ;;  %v2016_v47 = vsel %vm2009_vm6, %v2012_v24, %v2015_v56 }
 0x123   :  { %v1906_v52 = vsel %vm1895_vm4, nan, %v1905_v60  ;;  %v2017_v13 = vsel %vm1895_vm4, nan, %v2016_v47  ;;  %v2112_v43 = vmul.f32 %v2111_v5, %v2109_v61 }
 0x124   :  { %v1909_v63 = vrot.slane %v1906_v52, 5  ;;  %v1908_v12 = vcombine.high %v1906_v52, %v1906_v52  ;;  %v2020_v18 = vrot.slane %v2017_v13, 2  ;;  %v2019_v31 = vcombine.high %v2017_v13, %v2017_v13 }
 0x125   :  { %v2113_v37 = vxor.u32 2147483648, %v2112_v43 }
 0x126   :  { %1913 = vst [vmem:[#allocation2 + $0x60] sm:$0x38] %v1909_v63  ;;  %v1910_v36 = vrot.slane %v1908_v12, 5  ;;  %2024 = vst [vmem:[#allocation2 + $0x70] ss:$-12 sps:$4 sm:$0xc1] %v2020_v18  }
 0x127   :  { %v2021_v7 = vrot.slane %v2019_v31, 2  ;;  %v2114_v59 = vsel %vm2031_vm7, %v2113_v37, %v2112_v43 }
 0x128   :  { %1914 = vst [vmem:[#allocation2 + $0x68] sm:$0x38] %v1910_v36  ;;  %v2117_v9 = vsel %vm2030_vm8, %v3218_v3, %v2114_v59 }
 0x129   :  { %2025 = vst [vmem:[#allocation2 + $0x78] ss:$-12 sps:$4 sm:$0xc1] %v2021_v7   ;;  %2431 = vcosq.f32 %v2117_v9 }
 0x12a   :  { %2433 = vsinq.f32 %v2117_v9 }
 0x136   :  { %v2432_v28 = vpop.eup %2431 }
 0x137   :  { %v2434_v14 = vpop.eup %2433  ;;  %v2129_v44 = vxor.u32 2147483648, %v2432_v28 }
 0x138   :  { %v2126_v27 = vxor.u32 2147483648, %v2434_v14 }
 0x139   :  { %v2130_v19 = vsel %vm2128_vm11, %v2129_v44, %v2434_v14  ;;  %v2241_v30 = vsel %vm2239_vm12, %v2129_v44, %v2434_v14 }
 0x13a   :  { %v2127_v40 = vsel %vm2125_vm13, %v2432_v28, %v2126_v27  ;;  %v2238_v22 = vsel %vm2236_vm14, %v2432_v28, %v2126_v27 }
 0x13b   :  { %v2131_v17 = vsel %vm2124_vm15, %v2127_v40, %v2130_v19  ;;  %v2242_v16 = vsel %vm2235_vm1, %v2238_v22, %v2241_v30 }
 0x13c   :  { %v2132_v32 = vsel %vm2121_vm10, nan, %v2131_v17  ;;  %v2243_v8 = vsel %vm2121_vm10, nan, %v2242_v16 }
 0x13d   :  { %v2135_v51 = vrot.slane %v2132_v32, 7  ;;  %v2134_v34 = vcombine.high %v2132_v32, %v2132_v32  ;;  %v2245_v42 = vcombine.low %v2243_v8, %v2243_v8  ;;  %2248 = vst [vmem:[#allocation2 + $0x78] sm:$0x70] %v2243_v8 }
 0x13f   :  { %2139 = vst [vmem:[#allocation2 + $0x70] sm:$0xe] %v2135_v51  ;;  %v2136_v26 = vrot.slane %v2134_v34, 7  ;;  %2247 = vst [vmem:[#allocation2 + $0x70] sm:$0x70] %v2245_v42 }
 0x141   :  { %2140 = vst [vmem:[#allocation2 + $0x78] sm:$0xe] %v2136_v26 }
 0x142   :  { %2446 = shalt.err (!%p2443_p4)
}
 0x143   :  { %s2464_s10 = smov 256   ;;  %s2465_s11 = smov 16  }
 0x144   :  { %2260 = dma.vmem_to_hbm [thread:$0]  %s2255_s8, 2048, %s3400_s1, [#allocation3], %s2464_s10, %s2464_s10, %s2465_s11  }
 0x145   :  { %2455 = dma.done.wait [#allocation3], 2048  }
 0x146   :  { %2456 = vsyncadd [#allocation3], 4294965248 }
 0x147   :  { %2264 = vsyncpa [#allocation3], 1 }

</bundles_post_ra>
